<compile_context>
chip_gen: v7x
topology: tpu7x:2x2x1
jax: 0.10.0
libtpu: 0.0.40
codegen_flags: <defaults>
</compile_context>

<pallas_src>
import numpy as np

import jax
import jax.numpy as jnp
from jax.experimental import pallas as pl
from jax.experimental.pallas import tpu as pltpu


def _odefunc_kernel(cid_ref, nblk_ref,                     # scalar prefetch (SMEM)
                    adj_ref, xk_ref, xi_ref, x0_ref,       # streamed VMEM blocks
                    cax_ref, cx_ref, wmat_ref,
                    out_ref, acc_ref):
    # adj_ref:  (TM, TK)  adjacency block (bf16 / int8 / f32)
    # xk_ref:   (TK, D)   x column block (matmul dtype)
    # xi_ref:   (TM, D)   this row tile of x, f32 (exact epilogue / xw LHS)
    # x0_ref:   (TM, D)   f32
    # cax_ref:  (TM, 1)   0.5*sigmoid(alpha) * row_scale
    # cx_ref:   (TM, 1)   0.5*sigmoid(alpha) + 1
    # wmat_ref: (D, D)    (W * clip(d,0,1)) @ W.T, f32
    # acc_ref:  (TM, D)   f32 accumulator for ax = adj @ x
    i = pl.program_id(0)
    k = pl.program_id(1)

    @pl.when(k == 0)
    def _init():
        acc_ref[...] = jnp.zeros_like(acc_ref)

    # Accumulate ax over this row tile's nonzero column blocks only.  Padded
    # trailing entries of the column-block list repeat the previous index, so
    # their DMA is skipped by the pipeline and the matmul is skipped here.
    @pl.when(k < nblk_ref[i])
    def _accumulate():
        a_blk = adj_ref[...].astype(jnp.float32).astype(xk_ref.dtype)
        acc_ref[...] += jnp.dot(a_blk, xk_ref[...],
                                preferred_element_type=jnp.float32)

    @pl.when(k == pl.num_programs(1) - 1)
    def _finalize():
        x_i = xi_ref[...]                                   # f32, exact tail
        xw = jnp.dot(x_i, wmat_ref[...],
                     preferred_element_type=jnp.float32)
        # f = alph*0.5*(ax - x) + xw - x + x0
        #   = cax*ax + xw + x0 - cx*x,  with the row scale folded into cax.
        out_ref[...] = (cax_ref[...] * acc_ref[...] + xw + x0_ref[...]
                        - cx_ref[...] * x_i)


def odefunc_w_prepare(adj, x0, alpha_train, d_param, w_param, *,
                      row_scale=None, tm=128, tk=512,
                      adj_dtype=jnp.bfloat16, x_dtype=jnp.bfloat16):
    """One-time preprocessing (everything here is constant across the many ODE
    function evaluations of a solve): pad + cast adj, build the per-row-tile
    nonzero column-block lists, fold sigmoid(alpha) (and an optional per-row
    scale, e.g. 1/deg for a 0/1 mask) into epilogue coefficients, and compute
    Wmat = (W * clip(d, 0, 1)) @ W.T.

    If `row_scale` is given, `adj` is interpreted as a (typically 0/1) matrix
    whose true adjacency is diag(row_scale) @ adj — the scale is applied in
    the kernel epilogue so adj can be stored in 1 byte/entry (int8/fp8).
    """
    N = adj.shape[0]
    D = x0.shape[1]
    assert adj.shape == (N, N) and x0.shape == (N, D)

    n_r = int(pl.cdiv(N, tm)) * tm          # rows padded to the row-tile size
    n_c = int(pl.cdiv(N, tk)) * tk          # cols padded to the col-tile size
    n_i, n_k = n_r // tm, n_c // tk

    # ---- adjacency: pad + cast once (NOT per call; it is the HBM-bound
    #      stream and re-padding it every evaluation would double the traffic).
    adj_np = np.zeros((n_r, n_c), np.float32)
    adj_np[:N, :N] = np.asarray(jax.device_get(adj), np.float32)
    adj_p = jnp.asarray(adj_np).astype(adj_dtype)

    # ---- block-sparsity structure: nonzero column blocks per row tile ------
    blk_nnz = (adj_np.reshape(n_i, tm, n_k, tk) != 0).any(axis=(1, 3))
    nblk = blk_nnz.sum(axis=1).astype(np.int32)
    max_blk = max(int(nblk.max()), 1)
    col_ids = np.zeros((n_i, max_blk), np.int32)
    for i in range(n_i):
        cols = np.flatnonzero(blk_nnz[i]).astype(np.int32)
        if cols.size == 0:
            cols = np.zeros((1,), np.int32)
        col_ids[i, :cols.size] = cols
        col_ids[i, cols.size:] = cols[-1]    # repeat last -> DMA is skipped

    # ---- per-row epilogue coefficients --------------------------------------
    s = jax.nn.sigmoid(jnp.asarray(alpha_train, jnp.float32))
    rs = (jnp.ones((N,), jnp.float32) if row_scale is None
          else jnp.asarray(row_scale, jnp.float32).reshape(N))
    cax = jnp.zeros((n_r,), jnp.float32).at[:N].set(0.5 * s * rs).reshape(n_r, 1)
    cx = jnp.zeros((n_r,), jnp.float32).at[:N].set(0.5 * s + 1.0).reshape(n_r, 1)

    # ---- x0 (set once per solve in the PyTorch module) ----------------------
    x0_p = jnp.zeros((n_r, D), jnp.float32).at[:N].set(
        jnp.asarray(x0, jnp.float32))

    # ---- Wmat hoisted out of the kernel, kept f32 for an exact tail ---------
    d = jnp.clip(jnp.asarray(d_param, jnp.float32), 0.0, 1.0)
    w = jnp.asarray(w_param, jnp.float32)
    w_mat = jnp.dot(w * d[None, :], w.T, preferred_element_type=jnp.float32)

    # ---- VMEM budget, clamped to this chip's capacity (v7x: 64 MiB/TC) ------
    adj_b = jnp.dtype(adj_dtype).itemsize
    x_b = jnp.dtype(x_dtype).itemsize
    est = (2 * tm * tk * adj_b          # adj block stream (double buffered)
           + 2 * tk * D * x_b           # x column-block stream
           + 2 * 3 * tm * D * 4         # x(f32) / x0 / out row tiles
           + 2 * 2 * tm * 128 * 4       # cax / cx (lane padded)
           + 2 * D * D * 4              # Wmat (constant index, 64 KiB)
           + tm * D * 4)                # ax accumulator scratch
    try:
        vmem_cap = int(pltpu.get_tpu_info().vmem_capacity_bytes)
    except Exception:                   # conservative fallback (v7x size)
        vmem_cap = 64 << 20
    vmem_limit = max(1 << 20, min(2 * est + (8 << 20), int(0.85 * vmem_cap)))

    return dict(N=N, D=D, tm=tm, tk=tk, n_r=n_r, n_c=n_c, max_blk=max_blk,
                adj_p=adj_p, col_ids=jnp.asarray(col_ids.reshape(-1)),
                nblk=jnp.asarray(nblk), cax=cax, cx=cx, x0_p=x0_p,
                w_mat=w_mat, x_dtype=x_dtype, vmem_limit=vmem_limit)


def odefunc_w_forward(prep, x, t=None):
    """One ODEFuncW.forward evaluation (t is unused by the math, as in PyTorch)."""
    del t
    N, D = prep["N"], prep["D"]
    tm, tk = prep["tm"], prep["tk"]
    n_r, n_c, max_blk = prep["n_r"], prep["n_c"], prep["max_blk"]

    x = jnp.asarray(x)
    # Per-call work on x only (N*D bytes — small next to the adj stream).
    x_mm = jnp.zeros((n_c, D), prep["x_dtype"]).at[:N].set(
        x.astype(prep["x_dtype"]))                       # adj@x RHS (matmul dtype)
    x_f32 = jnp.zeros((n_r, D), jnp.float32).at[:N].set(
        x.astype(jnp.float32))                           # xw LHS + exact epilogue

    grid = (n_r // tm, max_blk)

    out = pl.pallas_call(
        _odefunc_kernel,
        out_shape=jax.ShapeDtypeStruct((n_r, D), jnp.float32),
        grid_spec=pltpu.PrefetchScalarGridSpec(
            num_scalar_prefetch=2,          # column-block ids + counts (SMEM)
            grid=grid,
            in_specs=[
                # adj block: data-dependent column-block index (skips zeros).
                pl.BlockSpec((tm, tk),
                             lambda i, k, cid, nb: (i, cid[i * max_blk + k])),
                # matching x column block for the adj@x accumulation.
                pl.BlockSpec((tk, D),
                             lambda i, k, cid, nb: (cid[i * max_blk + k], 0)),
                # f32 row tile of x for xw and the elementwise tail.
                pl.BlockSpec((tm, D), lambda i, k, cid, nb: (i, 0)),
                pl.BlockSpec((tm, D), lambda i, k, cid, nb: (i, 0)),   # x0
                pl.BlockSpec((tm, 1), lambda i, k, cid, nb: (i, 0)),   # cax
                pl.BlockSpec((tm, 1), lambda i, k, cid, nb: (i, 0)),   # cx
                pl.BlockSpec((D, D), lambda i, k, cid, nb: (0, 0)),    # Wmat
            ],
            out_specs=pl.BlockSpec((tm, D), lambda i, k, cid, nb: (i, 0)),
            scratch_shapes=[pltpu.VMEM((tm, D), jnp.float32)],
        ),
        compiler_params=pltpu.CompilerParams(
            dimension_semantics=("parallel", "arbitrary"),
            vmem_limit_bytes=prep["vmem_limit"]),
    )(prep["col_ids"], prep["nblk"], prep["adj_p"], x_mm, x_f32,
      prep["x0_p"], prep["cax"], prep["cx"], prep["w_mat"])
    return out[:N]


def odefunc_w_reference(adj, x, x0, alpha_train, d_param, w_param):
    alph = jax.nn.sigmoid(alpha_train)[:, None]
    ax = adj @ x
    d = jnp.clip(d_param, 0.0, 1.0)
    w_mat = (w_param * d) @ w_param.T
    xw = x @ w_mat
    return alph * 0.5 * (ax - x) + xw - x + x0


if __name__ == "__main__":
    # N = 200 nodes (not a multiple of any tile -> exercises padding),
    # hidden_dim = 64 -> D = 2*hidden_dim = 128.
    N = 200
    hidden_dim = 64
    D = 2 * hidden_dim
    alpha = 1.0   # opt['alpha']

    key = jax.random.PRNGKey(0)
    k_adj, k_x, k_x0, k_a, k_w, k_d = jax.random.split(key, 6)

    # Row-normalized random 0/1 adjacency: adj = diag(1/deg) @ mask.
    # TODO(synk): torch.spmm uses a sparse adj; it is materialized densely here
    # (block-level zero columns are still skipped by the kernel).
    raw = jax.random.uniform(k_adj, (N, N), dtype=jnp.float32)
    mask = (raw > 0.8).astype(jnp.float32)
    deg = jnp.maximum(mask.sum(axis=1), 1.0)
    adj = mask / deg[:, None]

    x = jax.random.normal(k_x, (N, D), dtype=jnp.float32)
    x0 = jax.random.normal(k_x0, (N, D), dtype=jnp.float32)

    alpha_train = alpha * jnp.ones((N,), jnp.float32) \
        + 0.1 * jax.random.normal(k_a, (N,), dtype=jnp.float32)
    w_param = jnp.eye(D, dtype=jnp.float32) \
        + 0.05 * jax.random.normal(k_w, (D, D), dtype=jnp.float32)
    d_param = jnp.ones((D,), jnp.float32) \
        + 0.2 * jax.random.normal(k_d, (D,), dtype=jnp.float32)

    ref = odefunc_w_reference(adj, x, x0, alpha_train, d_param, w_param)

    # 1) f32 matmuls, multi-block K axis (tm=128, tk=128 -> grid (2, 2)).
    prep = odefunc_w_prepare(adj, x0, alpha_train, d_param, w_param,
                             tm=128, tk=128,
                             adj_dtype=jnp.float32, x_dtype=jnp.float32)
    out = jax.block_until_ready(odefunc_w_forward(prep, x))
    assert out.shape == (N, D)
    assert jnp.allclose(out, ref, atol=2e-4, rtol=2e-4)

    # 2) default fast path: bf16 adj / x matmul streams, f32 accumulation and
    #    an f32 epilogue; larger tk column blocks.
    prep_bf16 = odefunc_w_prepare(adj, x0, alpha_train, d_param, w_param,
                                  tm=128, tk=512)
    out_bf16 = jax.block_until_ready(odefunc_w_forward(prep_bf16, x))
    assert jnp.allclose(out_bf16, ref, atol=5e-2, rtol=5e-2)

    # 3) int8 binary mask with the 1/deg row scale folded into the epilogue:
    #    1 byte/entry on the dominant HBM stream (exact 0/1 values), portable
    #    across v5e/v6e/v7x since the kernel upcasts before the dot.
    prep_i8 = odefunc_w_prepare(mask, x0, alpha_train, d_param, w_param,
                                row_scale=1.0 / deg, tm=128, tk=128,
                                adj_dtype=jnp.int8, x_dtype=jnp.bfloat16)
    out_i8 = jax.block_until_ready(odefunc_w_forward(prep_i8, x))
    assert jnp.allclose(out_i8, ref, atol=5e-2, rtol=5e-2)

    # 4) block-sparse skipping: zero a whole (row-tile, col-tile) block so the
    #    row tiles have different column-block counts (exercises the nblk
    #    guard and the duplicated trailing column ids).
    adj_bs = adj.at[128:, :128].set(0.0)
    ref_bs = odefunc_w_reference(adj_bs, x, x0, alpha_train, d_param, w_param)
    prep_bs = odefunc_w_prepare(adj_bs, x0, alpha_train, d_param, w_param,
                                tm=128, tk=128,
                                adj_dtype=jnp.float32, x_dtype=jnp.float32)
    out_bs = jax.block_until_ready(odefunc_w_forward(prep_bs, x))
    assert jnp.allclose(out_bs, ref_bs, atol=2e-4, rtol=2e-4)

    print("KERNEL_OK")
</pallas_src>

<mosaic_0001>
module attributes {stable_mosaic.version = 11 : i64} {
  func.func @_odefunc_kernel(%arg0: i32, %arg1: i32, %arg2: memref<4xi32, #tpu.memory_space<smem>>, %arg3: memref<2xi32, #tpu.memory_space<smem>>, %arg4: memref<128x128xf32, #tpu.memory_space<vmem>>, %arg5: memref<128x128xf32, #tpu.memory_space<vmem>>, %arg6: memref<128x128xf32, #tpu.memory_space<vmem>>, %arg7: memref<128x128xf32, #tpu.memory_space<vmem>>, %arg8: memref<128x1xf32, #tpu.memory_space<vmem>>, %arg9: memref<128x1xf32, #tpu.memory_space<vmem>>, %arg10: memref<128x128xf32, #tpu.memory_space<vmem>>, %arg11: memref<128x128xf32, #tpu.memory_space<vmem>>, %arg12: memref<128x128xf32, #tpu.memory_space<vmem>>) attributes {dimension_semantics = [#tpu.dimension_semantics<parallel>, #tpu.dimension_semantics<arbitrary>], iteration_bounds = array<i64: 2, 2>, scalar_prefetch = 2 : i64, scratch_operands = 1 : i64, tpu.core_type = #tpu.core_type<tc>, window_params = [{transform_indices = @transform_0, window_bounds = array<i64: 128, 128>}, {transform_indices = @transform_1, window_bounds = array<i64: 128, 128>}, {transform_indices = @transform_2, window_bounds = array<i64: 128, 128>}, {transform_indices = @transform_3, window_bounds = array<i64: 128, 128>}, {transform_indices = @transform_4, window_bounds = array<i64: 128, 1>}, {transform_indices = @transform_5, window_bounds = array<i64: 128, 1>}, {pipeline_mode = #tpu.pipeline_mode<synchronous>, transform_indices = @transform_6, window_bounds = array<i64: 128, 128>}, {transform_indices = @transform_7, window_bounds = array<i64: 128, 128>}]} {
    %c0_i32 = arith.constant 0 : i32
    %0 = arith.cmpi eq, %arg1, %c0_i32 : i32
    %1 = arith.extui %0 : i1 to i32
    %c0_i32_0 = arith.constant 0 : i32
    %2 = arith.cmpi ne, %1, %c0_i32_0 : i32
    scf.if %2 {
      %cst = arith.constant 0.000000e+00 : f32
      %11 = vector.broadcast %cst : f32 to vector<128x128xf32>
      %c0 = arith.constant 0 : index
      %c0_3 = arith.constant 0 : index
      %12 = vector.load %arg12[%c0, %c0_3] : memref<128x128xf32, #tpu.memory_space<vmem>>, vector<128x128xf32>
      tpu.vector_store %arg12[%c0, %c0_3], %11 {strides = array<i32>} : memref<128x128xf32, #tpu.memory_space<vmem>>, vector<128x128xf32>,
    } else {
    }
    %3 = arith.index_cast %arg0 : i32 to index
    %4 = memref.load %arg3[%3] : memref<2xi32, #tpu.memory_space<smem>>
    %5 = arith.cmpi slt, %arg1, %4 : i32
    %6 = arith.extui %5 : i1 to i32
    %c0_i32_1 = arith.constant 0 : i32
    %7 = arith.cmpi ne, %6, %c0_i32_1 : i32
    scf.if %7 {
      %c0 = arith.constant 0 : index
      %c0_3 = arith.constant 0 : index
      %11 = vector.load %arg4[%c0, %c0_3] : memref<128x128xf32, #tpu.memory_space<vmem>>, vector<128x128xf32>
      %c0_4 = arith.constant 0 : index
      %c0_5 = arith.constant 0 : index
      %12 = vector.load %arg12[%c0_4, %c0_5] : memref<128x128xf32, #tpu.memory_space<vmem>>, vector<128x128xf32>
      %c0_6 = arith.constant 0 : index
      %c0_7 = arith.constant 0 : index
      %13 = vector.load %arg5[%c0_6, %c0_7] : memref<128x128xf32, #tpu.memory_space<vmem>>, vector<128x128xf32>
      %cst = arith.constant dense<0.000000e+00> : vector<128x128xf32>
      %14 = tpu.matmul %11, %13, %cst {dimension_numbers = #tpu.dot_dimension_numbers<[1], [0], [0], [1], [0, 0, 1, 1], [], []>} : vector<128x128xf32>, vector<128x128xf32>, vector<128x128xf32> -> vector<128x128xf32>
      %15 = arith.addf %12, %14 : vector<128x128xf32>
      %c0_8 = arith.constant 0 : index
      %c0_9 = arith.constant 0 : index
      %16 = vector.load %arg12[%c0_8, %c0_9] : memref<128x128xf32, #tpu.memory_space<vmem>>, vector<128x128xf32>
      tpu.vector_store %arg12[%c0_8, %c0_9], %15 {strides = array<i32>} : memref<128x128xf32, #tpu.memory_space<vmem>>, vector<128x128xf32>,
    } else {
    }
    %c1_i32 = arith.constant 1 : i32
    %8 = arith.cmpi eq, %arg1, %c1_i32 : i32
    %9 = arith.extui %8 : i1 to i32
    %c0_i32_2 = arith.constant 0 : i32
    %10 = arith.cmpi ne, %9, %c0_i32_2 : i32
    scf.if %10 {
      %c0 = arith.constant 0 : index
      %c0_3 = arith.constant 0 : index
      %11 = vector.load %arg6[%c0, %c0_3] : memref<128x128xf32, #tpu.memory_space<vmem>>, vector<128x128xf32>
      %c0_4 = arith.constant 0 : index
      %c0_5 = arith.constant 0 : index
      %12 = vector.load %arg10[%c0_4, %c0_5] : memref<128x128xf32, #tpu.memory_space<vmem>>, vector<128x128xf32>
      %cst = arith.constant dense<0.000000e+00> : vector<128x128xf32>
      %13 = tpu.matmul %11, %12, %cst {dimension_numbers = #tpu.dot_dimension_numbers<[1], [0], [0], [1], [0, 0, 1, 1], [], []>} : vector<128x128xf32>, vector<128x128xf32>, vector<128x128xf32> -> vector<128x128xf32>
      %c0_6 = arith.constant 0 : index
      %c0_7 = arith.constant 0 : index
      %14 = vector.load %arg8[%c0_6, %c0_7] : memref<128x1xf32, #tpu.memory_space<vmem>>, vector<128x1xf32>
      %c0_8 = arith.constant 0 : index
      %c0_9 = arith.constant 0 : index
      %15 = vector.load %arg12[%c0_8, %c0_9] : memref<128x128xf32, #tpu.memory_space<vmem>>, vector<128x128xf32>
      %16 = vector.broadcast %14 : vector<128x1xf32> to vector<128x128xf32>
      %17 = arith.mulf %16, %15 : vector<128x128xf32>
      %18 = arith.addf %17, %13 : vector<128x128xf32>
      %c0_10 = arith.constant 0 : index
      %c0_11 = arith.constant 0 : index
      %19 = vector.load %arg7[%c0_10, %c0_11] : memref<128x128xf32, #tpu.memory_space<vmem>>, vector<128x128xf32>
      %20 = arith.addf %18, %19 : vector<128x128xf32>
      %c0_12 = arith.constant 0 : index
      %c0_13 = arith.constant 0 : index
      %21 = vector.load %arg9[%c0_12, %c0_13] : memref<128x1xf32, #tpu.memory_space<vmem>>, vector<128x1xf32>
      %22 = vector.broadcast %21 : vector<128x1xf32> to vector<128x128xf32>
      %23 = arith.mulf %22, %11 : vector<128x128xf32>
      %24 = arith.subf %20, %23 : vector<128x128xf32>
      %c0_14 = arith.constant 0 : index
      %c0_15 = arith.constant 0 : index
      %25 = vector.load %arg11[%c0_14, %c0_15] : memref<128x128xf32, #tpu.memory_space<vmem>>, vector<128x128xf32>
      tpu.vector_store %arg11[%c0_14, %c0_15], %24 {strides = array<i32>} : memref<128x128xf32, #tpu.memory_space<vmem>>, vector<128x128xf32>,
    } else {
    }
    return
  }
  func.func @transform_0(%arg0: i32, %arg1: i32, %arg2: memref<4xi32, #tpu.memory_space<smem>>, %arg3: memref<2xi32, #tpu.memory_space<smem>>) -> (i32, i32) {
    %c2_i32 = arith.constant 2 : i32
    %0 = arith.muli %arg0, %c2_i32 : i32
    %1 = arith.addi %0, %arg1 : i32
    %2 = arith.index_cast %1 : i32 to index
    %3 = memref.load %arg2[%2] : memref<4xi32, #tpu.memory_space<smem>>
    %c0_i32 = arith.constant 0 : i32
    return %arg0, %3 : i32, i32
  }
  func.func @transform_1(%arg0: i32, %arg1: i32, %arg2: memref<4xi32, #tpu.memory_space<smem>>, %arg3: memref<2xi32, #tpu.memory_space<smem>>) -> (i32, i32) {
    %c2_i32 = arith.constant 2 : i32
    %0 = arith.muli %arg0, %c2_i32 : i32
    %1 = arith.addi %0, %arg1 : i32
    %2 = arith.index_cast %1 : i32 to index
    %3 = memref.load %arg2[%2] : memref<4xi32, #tpu.memory_space<smem>>
    %c0_i32 = arith.constant 0 : i32
    %c0_i32_0 = arith.constant 0 : i32
    return %3, %c0_i32 : i32, i32
  }
  func.func @transform_2(%arg0: i32, %arg1: i32, %arg2: memref<4xi32, #tpu.memory_space<smem>>, %arg3: memref<2xi32, #tpu.memory_space<smem>>) -> (i32, i32) {
    %c0_i32 = arith.constant 0 : i32
    %c0_i32_0 = arith.constant 0 : i32
    return %arg0, %c0_i32 : i32, i32
  }
  func.func @transform_3(%arg0: i32, %arg1: i32, %arg2: memref<4xi32, #tpu.memory_space<smem>>, %arg3: memref<2xi32, #tpu.memory_space<smem>>) -> (i32, i32) {
    %c0_i32 = arith.constant 0 : i32
    %c0_i32_0 = arith.constant 0 : i32
    return %arg0, %c0_i32 : i32, i32
  }
  func.func @transform_4(%arg0: i32, %arg1: i32, %arg2: memref<4xi32, #tpu.memory_space<smem>>, %arg3: memref<2xi32, #tpu.memory_space<smem>>) -> (i32, i32) {
    %c0_i32 = arith.constant 0 : i32
    %c0_i32_0 = arith.constant 0 : i32
    return %arg0, %c0_i32 : i32, i32
  }
  func.func @transform_5(%arg0: i32, %arg1: i32, %arg2: memref<4xi32, #tpu.memory_space<smem>>, %arg3: memref<2xi32, #tpu.memory_space<smem>>) -> (i32, i32) {
    %c0_i32 = arith.constant 0 : i32
    %c0_i32_0 = arith.constant 0 : i32
    return %arg0, %c0_i32 : i32, i32
  }
  func.func @transform_6(%arg0: i32, %arg1: i32, %arg2: memref<4xi32, #tpu.memory_space<smem>>, %arg3: memref<2xi32, #tpu.memory_space<smem>>) -> (i32, i32) {
    %c0_i32 = arith.constant 0 : i32
    %c0_i32_0 = arith.constant 0 : i32
    %c0_i32_1 = arith.constant 0 : i32
    return %c0_i32, %c0_i32_0 : i32, i32
  }
  func.func @transform_7(%arg0: i32, %arg1: i32, %arg2: memref<4xi32, #tpu.memory_space<smem>>, %arg3: memref<2xi32, #tpu.memory_space<smem>>) -> (i32, i32) {
    %c0_i32 = arith.constant 0 : i32
    %c0_i32_0 = arith.constant 0 : i32
    return %arg0, %c0_i32 : i32, i32
  }
}

</mosaic_0001>

<bundles_post_ra>
// kernel: tpu_custom_call.1
= control target key start
LH: loop header
LB: loop body
LE: loop exit
PB: predicated region body
PF: predicated region fallthrough
CT: control target
= control target key end

     0   :  { %s3066_s0 = inlined_call_operand.vmem [shape: s32[4], index: 0, kind: input, shape index: {}]   ;;  %s3067_s2 = inlined_call_operand.vmem [shape: f32[256,256], index: 2, kind: input, shape index: {}]   ;;  %s3068_s3 = inlined_call_operand.hbm [shape: f32[256,128], index: 3, kind: input, shape index: {}]   ;;  %s3069_s4 = inlined_call_operand.hbm [shape: f32[256,128], index: 4, kind: input, shape index: {}]   ;;  %s3070_s5 = inlined_call_operand.hbm [shape: f32[256,128], index: 5, kind: input, shape index: {}]   ;;  %s3071_s6 = inlined_call_operand.vmem [shape: f32[256,1], index: 6, kind: input, shape index: {}]   ;;  %s3072_s7 = inlined_call_operand.vmem [shape: f32[256,1], index: 7, kind: input, shape index: {}]   ;;  %s3073_s8 = inlined_call_operand.hbm [shape: f32[128,128], index: 8, kind: input, shape index: {}]   ;;  %s3074_s9 = inlined_call_operand.hbm [shape: f32[256,128], index: 9, kind: output, shape index: {}]   ;;  %s3075_s1 = inlined_call_operand.vmem [shape: s32[2], index: 1, kind: input, shape index: {}]  }
   0x1   :  { %3099 = sst [smem:[#allocation41_spill]] %s3071_s6  ;;  %s14_s11 = sshll.u32 %s3066_s0, 4  ;;  %s15_s11 = int_to_ptr.vmem [resolvable:$true] %s14_s11 }
   0x2   :  { %3100 = sst [smem:[#allocation42_spill]] %s3072_s7  ;;  %s18_s14 = sshll.u32 %s3075_s1, 4  ;;  %s19_s14 = int_to_ptr.vmem [resolvable:$true] %s18_s14 }
   0x3   :  { %3101 = sst [smem:[#allocation43_spill]] %s3074_s9  ;;  %s2013_s15 = scalar_lea.vmem %s15_s11, 16 }
   0x4   :  { %p2014_p0 = scmp.ne.s32.totalorder %s15_s11, %s2013_s15  ;;  %p2018_p1 = scmp.lt.s32.totalorder %s15_s11, %s15_s11 }
   0x5   :  { %p2019_p2 = scmp.lt.s32.totalorder %s2013_s15, %s2013_s15 }
   0x7   :  { %p2020_p3 = por %p2019_p2, %p2018_p1 }
   0x9   :  { %p2021_p4 = pnand %p2020_p3, %p2014_p0 }
   0xb   :  { %2024 = shalt.err (!%p2021_p4)  }
   0xc   :  { %s2299_s16 = smov [#allocation4]   ;;  %s2025_s17 = scalar_lea.vmem %s19_s14, 16 }
   0xd   :  { %17 = dma.vmem_to_smem %s15_s11, 16, %s2299_s16, [#allocation3] }
   0xe   :  { %p2026_p5 = scmp.ne.s32.totalorder %s19_s14, %s2025_s17  ;;  %p2030_p6 = scmp.lt.s32.totalorder %s19_s14, %s19_s14 }
   0xf   :  { %p2031_p7 = scmp.lt.s32.totalorder %s2025_s17, %s2025_s17 }
  0x11   :  { %p2032_p8 = por %p2031_p7, %p2030_p6 }
  0x13   :  { %p2033_p9 = pnand %p2032_p8, %p2026_p5 }
  0x15   :  { %2036 = shalt.err (!%p2033_p9)  }
  0x16   :  { %s2300_s0 = smov [#allocation5]  }
  0x17   :  { %21 = dma.vmem_to_smem %s19_s14, 16, %s2300_s0, [#allocation3] }
  0x18   :  { %2229 = dma.done.wait [#allocation3], 32 }
  0x19   :  { %2230 = vsyncadd [#allocation3], 4294967264 }
  0x1a   :  { %23 = sfence }
  0x1b   :  { %24 = vsyncpa [#allocation8], 0 }
  0x1c   :  { %26 = vsyncpa [#allocation8 + $0x1], 0 }
  0x1d   :  { %27 = vsyncpa [#allocation11], 0 }
  0x1e   :  { %29 = vsyncpa [#allocation11 + $0x1], 0 }
  0x1f   :  { %30 = vsyncpa [#allocation14], 0 }
  0x20   :  { %31 = vsyncpa [#allocation9], 0 }
  0x21   :  { %33 = vsyncpa [#allocation9 + $0x1], 0  ;;  %s2370_s1 = smov 0   ;;  %s2372_s18 = smov 0  }
  0x22   :  { %s2374_s19 = smov 0   ;;  %s2376_s20 = smov 0  }
  0x23   :  { %s2378_s21 = smov 0   ;;  %s2380_s22 = smov 0  }
  0x24   :  { %s2382_s23 = smov 0   ;;  %s2384_s24 = smov 0  }
  0x25   :  { %s2386_s25 = smov 0   ;;  %s2388_s26 = smov 0  }
  0x26   :  { %s2390_s27 = smov 0   ;;  %s2392_s28 = smov 0  }
  0x27   :  { %s2394_s29 = smov 0  }
  0x28 LB: > { %3102 = sst [smem:[#allocation22_spill]] %s2249_s1  ;;  %s2436_s30 = sadd.s32 4294967295, %s2297_s29   ;;  %s2297_s29 = sphi %s2394_s29, %s39_s29   ;;  %s2293_s28 = sphi %s2392_s28, %s3181_s28   ;;  %s2289_s27 = sphi %s2390_s27, %s3170_s27   ;;  %s2285_s26 = sphi %s2388_s26, %s3180_s26   ;;  %s2281_s25 = sphi %s2386_s25, %s3169_s25   ;;  %s2277_s24 = sphi %s2384_s24, %s3179_s24   ;;  %s2273_s23 = sphi %s2382_s23, %s3178_s23   ;;  %s2269_s22 = sphi %s2380_s22, %s3177_s22   ;;  %s2265_s21 = sphi %s2378_s21, %s3176_s21   ;;  %s2261_s20 = sphi %s2376_s20, %s3175_s20   ;;  %s2257_s19 = sphi %s2374_s19, %s3174_s19   ;;  %s2253_s18 = sphi %s2372_s18, %s3173_s18   ;;  %s2249_s1 = sphi %s2370_s1, %s3172_s1  }
  0x29   : > { %3103 = sst [smem:[#allocation23_spill]] %s2265_s21  ;;  %s48_s11 = sadd.s32 1, %s2289_s27 }
  0x2a   : > { %3104 = sst [smem:[#allocation24_spill]] %s2273_s23  ;;  %s51_s12 = sadd.s32 1, %s2293_s28 }
  0x2b   : > { %3105 = sst [smem:[#allocation25_spill]] %s2281_s25  ;;  %p49_p10 = scmp.ge.s32.totalorder %s48_s11, 2 }
  0x2c   : > { %3106 = sst [smem:[#allocation26_spill]] %s2285_s26  ;;  %s1553_s13 = sshll.u32 %s2293_s28, 1 }
  0x2d   : > { %3107 = sst [smem:[#allocation27_spill]] %s2289_s27  ;;  %s2443_s14 = sadd.s32 %s2289_s27, %s1553_s13 }
  0x2e   : > { %s3183_s11 = smov (%p49_p10, %s48_s11), 0  ;;  %s3185_s12 = smov (!%p49_p10, %s51_s12), %s2293_s28 }
  0x2f   : > { %3108 = sst [smem:[#allocation28_spill]] %s3183_s11  ;;  %p73_p11 = scmp.ne.s32.totalorder %s2277_s24, %s2273_s23 }
  0x30   : > { %s57_s16 = sld [smem:[#allocation4 + %s2443_s14]]  ;;  %p53_p12 = scmp.ge.s32.totalorder %s3185_s12, 2 }
  0x31   : > { %p74_p13 = scmp.eq.s32.totalorder %s2297_s29, 0  ;;  %s91_s17 = sld [smem:[#allocation4 + %s2443_s14]] }
  0x32   : > { %s98_s0 = sadd.s32 1, %s2269_s22  ;;  %s3187_s12 = smov (%p53_p12, %s3185_s12), 0 }
  0x33   : > { %3109 = sst [smem:[#allocation29_spill]] %s3187_s12  ;;  %p2459_p0 = por %p74_p13, %p73_p11 }
  0x34   : > { %p105_p1 = scmp.ne.s32.totalorder %s2269_s22, %s2265_s21  ;;  %s1554_s10 = sshll.u32 %s3187_s12, 1 }
  0x35   : > { %s3110_s13 = scalar_select %p2459_p0, 1, 0 }
  0x36   : > { %s61_s15 = ssub.s32 %s2293_s28, %s3187_s12  ;;  %s59_s27 = sadd.s32 %s1554_s10, %s3183_s11 }
  0x37   : > { %p2471_p2 = por %p105_p1, %p74_p13  ;;  %s60_s25 = sld [smem:[#allocation4 + %s59_s27]] }
  0x38   : > { %s94_s7 = sld [smem:[#allocation4 + %s59_s27]]  ;;  %p111_p3 = scmp.ne.s32.totalorder %s2265_s21, %s2261_s20 }
  0x39   : > { %s3111_s9 = scalar_select %p2471_p2, 1, 0 }
  0x3a   : > { %p3085_p4 = scmp.eq.s32.totalorder %s2436_s30, 0  ;;  %p122_p5 = scmp.eq.s32.totalorder %s61_s15, 0 }
  0x3b   : > { %s124_s12 = sadd.s32 1, %s2257_s19  ;;  %p131_p7 = scmp.ne.s32.totalorder %s2257_s19, %s2253_s18 }
  0x3c   : > { %p2481_p6 = por %p3085_p4, %p111_p3  ;;  %p137_p9 = scmp.ne.s32.totalorder %s2253_s18, %s2249_s1 }
  0x3d   : > { %s2488_s27 = scalar_select %p122_p5, %s2257_s19, %s124_s12  }
  0x3e   : > { %s3112_s10 = scalar_select %p2481_p6, 1, 0 }
  0x3f   : > { %3114 = sst [smem:[#allocation31_spill]] %s2488_s27  ;;  %p2495_p8 = por %p131_p7, %p74_p13 }
  0x40   : > { %3113 = sst [smem:[#allocation30_spill]] %s3112_s10  ;;  %s62_s11 = ssub.s32 %s57_s16, %s60_s25 }
  0x41   : > { %s3115_s20 = scalar_select %p2495_p8, 1, 0 }
  0x42   : > { %s95_s6 = ssub.s32 %s91_s17, %s94_s7  ;;  %s63_s26 = sor.u32 %s62_s11, %s61_s15 }
  0x43   : > { %p96_p10 = scmp.eq.s32.totalorder %s95_s6, 0  ;;  %p64_p11 = scmp.eq.s32.totalorder %s63_s26, 0 }
  0x44   : > { %p2506_p12 = por %p137_p9, %p3085_p4  ;;  %s3118_s10 = sadd.s32 1, %s2277_s24 }
  0x45   : > { %s2511_s27 = scalar_select %p96_p10, %s2269_s22, %s98_s0  }
  0x46   : > { %s3116_s12 = scalar_select %p2506_p12, 1, 0 }
  0x47   : > { %3117 = sst [smem:[#allocation32_spill]] %s2511_s27  ;;  %p260_p13 = scmp.eq.s32.totalorder %s2436_s30, 3 }
  0x48   : > { %s2516_s21 = scalar_select %p64_p11, %s2277_s24, %s3118_s10  }
  0x49   : > { %s3120_s23 = sadd.s32 4294967294, %s2297_s29   ;;  %p1557_p3 = scmp.ge.s32.totalorder %s2297_s29, 1 }
  0x4a   : > { %3119 = sst [smem:[#allocation33_spill]] %s2516_s21  ;;  %p266_p1 = scmp.eq.s32.totalorder %s3120_s23, 3 }
  0x4b   : > { %p273_p5 = scmp.lt.s32.totalorder %s2297_s29, 5  ;;  %p2526_p6 = por %p260_p13, %p131_p7 }
  0x4c   : > { %p2533_p4 = por %p266_p1, %p137_p9  ;;  %s2301_s23 = smov [#allocation13]  }
  0x4d   : > { %s3121_s6 = scalar_select %p2526_p6, 1, 0 }
  0x4e   : > { %s3123_s7 = scalar_select %p2533_p4, 1, 0 }
  0x4f   : > { %3122 = sst [smem:[#allocation34_spill]] %s3121_s6  ;;  %p2537_p10 = pnand %p1557_p3, %p273_p5 }
  0x50   : > { %3124 = sst [smem:[#allocation35_spill]] %s3123_s7  ;;  %s285_s26 = sshll.u32 %s2301_s23, 4  ;;  %s286_s26 = int_to_ptr.vmem [resolvable:$true] %s285_s26 }
  0x51   : > { %s3125_s25 = scalar_select %p2537_p10, 1, 0 }
  0x52   : > { %p1885_p11 = pneg %p2537_p10  ;;  %p3126_p12 = scmp.eq.s32.totalorder %s2436_s30, 0 }
  0x53   : > { %s2037_s17 = scalar_lea.hbm %s3073_s8, 2048 }
  0x54   : > { %p2545_p7 = pnand %p1885_p11, %p3126_p12  ;;  %p2038_p9 = scmp.ne.s32.totalorder %s3073_s8, %s2037_s17 }
  0x55   : > { %p2044_p12 = scmp.lt.u32.totalorder %s2037_s17, %s3073_s8 }
  0x56   : > { %p2039_p13 = pneg %p2545_p7 }
  0x58   : > { %p2040_p1 = pnand %p2039_p13, %p2038_p9 }
  0x5a   : > { %p2041_p3 = pneg %p2040_p1 }
  0x5c   : > { %p2046_p5 = pnand %p2044_p12, %p2041_p3 }
  0x5e   : > { %2049 = shalt.err (!%p2046_p5)
}
  0x5f   : > { %s2050_s27 = scalar_lea.vmem %s286_s26, 2048  ;;  %p2058_p10 = scmp.lt.s32.totalorder %s286_s26, %s286_s26 }
  0x60   : > { %p2051_p11 = scmp.ne.s32.totalorder %s286_s26, %s2050_s27  ;;  %p2059_p2 = scmp.lt.s32.totalorder %s2050_s27, %s2050_s27 }
  0x62   : > { %p2053_p4 = pnand %p2051_p11, %p2039_p13  ;;  %p2060_p8 = por %p2059_p2, %p2058_p10 }
  0x64   : > { %p2054_p6 = pneg %p2053_p4 }
  0x66   : > { %p2061_p0 = pnand %p2060_p8, %p2054_p6 }
  0x68   : > { %2064 = shalt.err (!%p2061_p0)
}
  0x69   : > { %s2302_s15 = smov 128   ;;  %s2303_s16 = smov 8  }
  0x6a   : > { %1888 = dma.hbm_to_vmem [thread:$0]  (!%p2545_p7), %s3073_s8, 2048, %s286_s26, [#allocation14], %s2302_s15, %s2302_s15, %s2303_s16  }
  0x6b   : > { %p1559_p9 = scmp.ge.s32.totalorder %s2297_s29, 4 }
  0x6c   : > { %p3128_p1 = scmp.ne.s32.totalorder (!%p1559_p9), %s3110_s13, 0 }
  0x6d   : > { %295 = sbr.rel (%p1559_p9) target bundleno = 213 (0xd5), region = 20 }
  0x74   : > { %298 = sbr.rel (!%p3128_p1) target bundleno = 134 (0x86), region = 24  ;;  %s305_s21 = sld [smem:[#allocation4 + %s2443_s14]] (%p3128_p1) }
  0x75   : > { %s300_s27 = sand.u32 (%p3128_p1), 1, %s2277_s24   ;;  %s1594_s17 = sshll.u32 (%p3128_p1), %s2293_s28, 5 }
  0x76   : > { %s1560_s23 = sshll.u32 (%p3128_p1), %s300_s27, 7 }
  0x77   : > { %s302_s13 = scalar_lea.vmem (%p3128_p1), [#allocation6], %s1560_s23 }
  0x7a   : > { %s308_s7 = sadd.s32 (%p3128_p1), %s1594_s17, %s305_s21 }
  0x7b   : > { %s1564_s1 = sshll.u32 %s308_s7, 3 }
  0x7c   : > { %s2574_s0 = scalar_lea.vmem %s3067_s2, %s1564_s1 }
  0x7d   : > { %v368_v0 = vld [vmem:[%s2574_s0] sm:$0xff]  ;;  %v370_v1 = vld [vmem:[%s2574_s0 + $0x10] sm:$0xff] }
  0x7e   : > { %v372_v2 = vld [vmem:[%s2574_s0 + $0x20] sm:$0xff]  ;;  %369 = vst [vmem:[%s302_s13] sm:$0xff] %v368_v0  ;;  %371 = vst [vmem:[%s302_s13 + $0x8] sm:$0xff] %v370_v1  ;;  %v374_v3 = vld [vmem:[%s2574_s0 + $0x30] sm:$0xff] }
  0x7f   : > { %373 = vst [vmem:[%s302_s13 + $0x10] sm:$0xff] %v372_v2  ;;  %v376_v4 = vld [vmem:[%s2574_s0 + $0x40] sm:$0xff]  ;;  %v378_v5 = vld [vmem:[%s2574_s0 + $0x50] sm:$0xff]  ;;  %375 = vst [vmem:[%s302_s13 + $0x18] sm:$0xff] %v374_v3 }
  0x80   : > { %377 = vst [vmem:[%s302_s13 + $0x20] sm:$0xff] %v376_v4  ;;  %379 = vst [vmem:[%s302_s13 + $0x28] sm:$0xff] %v378_v5  ;;  %v380_v6 = vld [vmem:[%s2574_s0 + $0x60] sm:$0xff]  ;;  %v382_v7 = vld [vmem:[%s2574_s0 + $0x70] sm:$0xff] }
  0x81   : > { %v384_v8 = vld [vmem:[%s2574_s0 + $0x80] sm:$0xff]  ;;  %381 = vst [vmem:[%s302_s13 + $0x30] sm:$0xff] %v380_v6  ;;  %383 = vst [vmem:[%s302_s13 + $0x38] sm:$0xff] %v382_v7  ;;  %v386_v9 = vld [vmem:[%s2574_s0 + $0x90] sm:$0xff] }
  0x82   : > { %385 = vst [vmem:[%s302_s13 + $0x40] sm:$0xff] %v384_v8  ;;  %v388_v10 = vld [vmem:[%s2574_s0 + $0xa0] sm:$0xff]  ;;  %v390_v11 = vld [vmem:[%s2574_s0 + $0xb0] sm:$0xff]  ;;  %387 = vst [vmem:[%s302_s13 + $0x48] sm:$0xff] %v386_v9 }
  0x83   : > { %389 = vst [vmem:[%s302_s13 + $0x50] sm:$0xff] %v388_v10  ;;  %391 = vst [vmem:[%s302_s13 + $0x58] sm:$0xff] %v390_v11  ;;  %v392_v12 = vld [vmem:[%s2574_s0 + $0xc0] sm:$0xff]  ;;  %v394_v13 = vld [vmem:[%s2574_s0 + $0xd0] sm:$0xff] }
  0x84   : > { %v396_v14 = vld [vmem:[%s2574_s0 + $0xe0] sm:$0xff]  ;;  %393 = vst [vmem:[%s302_s13 + $0x60] sm:$0xff] %v392_v12  ;;  %395 = vst [vmem:[%s302_s13 + $0x68] sm:$0xff] %v394_v13  ;;  %v398_v15 = vld [vmem:[%s2574_s0 + $0xf0] sm:$0xff] }
  0x85   : > { %397 = vst [vmem:[%s302_s13 + $0x70] sm:$0xff] %v396_v14  ;;  %399 = vst [vmem:[%s302_s13 + $0x78] sm:$0xff] %v398_v15 }
  0x86 PF: > { %s430_s1 = sand.u32 1, %s2297_s29   ;;  %s432_s6 = sand.u32 1, %s2257_s19  }
  0x87   : > { %s2594_s7 = sshll.u32 %s432_s6, 7  ;;  %s1596_s26 = sshll.u32 %s2293_s28, 11 }
  0x88   : > { %s2602_s10 = scalar_lea.hbm %s3069_s4, %s1596_s26  ;;  %s434_s21 = scalar_lea.vmem [#allocation10], %s2594_s7 }
  0x89   : > { %s441_s27 = sshll.u32 %s434_s21, 4  ;;  %s2607_s17 = scalar_lea.sflag [#allocation11], %s430_s1  ;;  %s2605_s27 = int_to_ptr.vmem [resolvable:$true] %s441_s27 }
  0x8a   : > { %s2065_s23 = scalar_lea.hbm %s2602_s10, 2048  ;;  %p3129_p2 = scmp.ne.s32.totalorder %s3115_s20, 0 }
  0x8b   : > { %p2066_p0 = scmp.ne.s32.totalorder %s2602_s10, %s2065_s23  ;;  %s2069_s13 = scalar_lea.hbm %s3069_s4, 4096 }
  0x8c   : > { %p2070_p8 = scmp.lt.u32.totalorder %s2602_s10, %s3069_s4  ;;  %p2071_p10 = scmp.lt.u32.totalorder %s2069_s13, %s2065_s23 }
  0x8d   : > { %p2067_p4 = pnand %p2066_p0, %p3129_p2  ;;  %p2073_p13 = scmp.lt.u32.totalorder %s2065_s23, %s2602_s10 }
  0x8e   : > { %p2072_p7 = por %p2071_p10, %p2070_p8 }
  0x8f   : > { %p2068_p6 = pneg %p2067_p4 }
  0x90   : > { %p2074_p3 = por %p2073_p13, %p2072_p7 }
  0x92   : > { %p2075_p12 = pnand %p2074_p3, %p2068_p6 }
  0x94   : > { %2078 = shalt.err (!%p2075_p12)
}
  0x95   : > { %s2079_s1 = scalar_lea.vmem %s2605_s27, 2048  ;;  %s2304_s16 = smov [#allocation10]  }
  0x96   : > { %p2080_p5 = scmp.ne.s32.totalorder %s2605_s27, %s2079_s1  ;;  %s2083_s21 = sshll.u32 %s2304_s16, 4  ;;  %s2084_s21 = int_to_ptr.vmem [resolvable:$false] %s2083_s21 }
  0x97   : > { %s2085_s11 = scalar_lea.vmem %s2084_s21, 4096  ;;  %p2086_p1 = scmp.lt.s32.totalorder %s2605_s27, %s2084_s21 }
  0x98   : > { %p2081_p11 = pnand %p2080_p5, %p3129_p2  ;;  %p2087_p0 = scmp.lt.s32.totalorder %s2085_s11, %s2079_s1 }
  0x9a   : > { %p2082_p9 = pneg %p2081_p11  ;;  %p2088_p4 = por %p2087_p0, %p2086_p1 }
  0x9c   : > { %p2089_p8 = pnand %p2088_p4, %p2082_p9 }
  0x9e   : > { %2092 = shalt.err (!%p2089_p8)
}
  0x9f   : > { %s2305_s23 = smov 128   ;;  %s2306_s0 = smov 8  }
  0xa0   : > { %1876 = dma.hbm_to_vmem [thread:$0]  (%p3129_p2), %s2602_s10, 2048, %s2605_s27, %s2607_s17, %s2305_s23, %s2305_s23, %s2306_s0  }
  0xa1   : > { %s455_s13 = scalar_lea.vmem [#allocation12], %s2594_s7  ;;  %s3095_s15 = sand.u32 1, %s2269_s22  }
  0xa2   : > { %s462_s6 = sshll.u32 %s455_s13, 4  ;;  %s2641_s21 = scalar_lea.hbm %s3070_s5, %s1596_s26  ;;  %s2647_s6 = int_to_ptr.vmem [resolvable:$true] %s462_s6 }
  0xa3   : > { %s2645_s11 = sshll.u32 %s3095_s15, 7  ;;  %p3130_p6 = scmp.ne.s32.totalorder %s3111_s9, 0 }
  0xa4   : > { %s2093_s27 = scalar_lea.hbm %s2641_s21, 2048  ;;  %s2097_s1 = scalar_lea.hbm %s3070_s5, 4096 }
  0xa5   : > { %s1873_s10 = scalar_select %p3130_p6, [#allocation4], [#allocation16] }
  0xa6   : > { %s3189_s14 = smov (!%p3130_p6, %s2443_s14), 0  ;;  %p2094_p10 = scmp.ne.s32.totalorder %s2641_s21, %s2093_s27 }
  0xa7   : > { %s2654_s7 = sld [smem:[%s1873_s10 + %s3189_s14]]  ;;  %p2098_p3 = scmp.lt.u32.totalorder %s2641_s21, %s3070_s5 }
  0xa8   : > { %p2095_p7 = pnand %p2094_p10, %p3129_p2  ;;  %p2099_p12 = scmp.lt.u32.totalorder %s2097_s1, %s2093_s27 }
  0xa9   : > { %p2101_p11 = scmp.lt.u32.totalorder %s2093_s27, %s2641_s21 }
  0xaa   : > { %p2096_p13 = pneg %p2095_p7  ;;  %p2100_p5 = por %p2099_p12, %p2098_p3 }
  0xac   : > { %p2102_p9 = por %p2101_p11, %p2100_p5 }
  0xae   : > { %p2103_p1 = pnand %p2102_p9, %p2096_p13 }
  0xb0   : > { %2106 = shalt.err (!%p2103_p1)
}
  0xb1   : > { %s2107_s14 = scalar_lea.vmem %s2647_s6, 2048  ;;  %s2307_s10 = smov [#allocation12]  }
  0xb2   : > { %p2108_p0 = scmp.ne.s32.totalorder %s2647_s6, %s2107_s14  ;;  %s2111_s26 = sshll.u32 %s2307_s10, 4  ;;  %s2112_s26 = int_to_ptr.vmem [resolvable:$false] %s2111_s26 }
  0xb3   : > { %s2113_s15 = scalar_lea.vmem %s2112_s26, 4096  ;;  %p2114_p10 = scmp.lt.s32.totalorder %s2647_s6, %s2112_s26 }
  0xb4   : > { %p2109_p4 = pnand %p2108_p0, %p3129_p2  ;;  %p2115_p7 = scmp.lt.s32.totalorder %s2113_s15, %s2107_s14 }
  0xb6   : > { %p2110_p8 = pneg %p2109_p4  ;;  %p2116_p3 = por %p2115_p7, %p2114_p10 }
  0xb8   : > { %p2117_p12 = pnand %p2116_p3, %p2110_p8 }
  0xba   : > { %2120 = shalt.err (!%p2117_p12)
}
  0xbb   : > { %1877 = dma.hbm_to_vmem [thread:$0]  (%p3129_p2), %s2641_s21, 2048, %s2647_s6, %s2607_s17, %s2305_s23, %s2305_s23, %s2306_s0  }
  0xbc   : > { %s410_s27 = scalar_lea.vmem [#allocation7], %s2645_s11  ;;  %s1595_s1 = sshll.u32 %s2654_s7, 11 }
  0xbd   : > { %s420_s13 = sshll.u32 %s410_s27, 4  ;;  %s2688_s20 = scalar_lea.hbm %s3068_s3, %s1595_s1  ;;  %s2682_s13 = int_to_ptr.vmem [resolvable:$true] %s420_s13 }
  0xbe   : > { %s3131_s10 = sand.u32 1, %s2269_s22   ;;  %s2121_s15 = scalar_lea.hbm %s2688_s20, 2048 }
  0xbf   : > { %s2692_s26 = scalar_lea.sflag [#allocation8], %s3131_s10  ;;  %p2122_p13 = scmp.ne.s32.totalorder %s2688_s20, %s2121_s15 }
  0xc0   : > { %s2125_s21 = scalar_lea.hbm %s3068_s3, 4096  ;;  %p2126_p11 = scmp.lt.u32.totalorder %s2688_s20, %s3068_s3 }
  0xc1   : > { %p2123_p2 = pnand %p2122_p13, %p3130_p6  ;;  %p2127_p9 = scmp.lt.u32.totalorder %s2125_s21, %s2121_s15 }
  0xc2   : > { %p2129_p0 = scmp.lt.u32.totalorder %s2121_s15, %s2688_s20 }
  0xc3   : > { %p2124_p5 = pneg %p2123_p2  ;;  %p2128_p1 = por %p2127_p9, %p2126_p11 }
  0xc5   : > { %p2130_p4 = por %p2129_p0, %p2128_p1 }
  0xc7   : > { %p2131_p8 = pnand %p2130_p4, %p2124_p5 }
  0xc9   : > { %2134 = shalt.err (!%p2131_p8)
}
  0xca   : > { %s2135_s27 = scalar_lea.vmem %s2682_s13, 2048  ;;  %s2308_s1 = smov [#allocation7]  }
  0xcb   : > { %p2136_p10 = scmp.ne.s32.totalorder %s2682_s13, %s2135_s27  ;;  %s2139_s16 = sshll.u32 %s2308_s1, 4  ;;  %s2140_s16 = int_to_ptr.vmem [resolvable:$false] %s2139_s16 }
  0xcc   : > { %s2141_s14 = scalar_lea.vmem %s2140_s16, 4096  ;;  %p2142_p12 = scmp.lt.s32.totalorder %s2682_s13, %s2140_s16 }
  0xcd   : > { %p2137_p7 = pnand %p2136_p10, %p3130_p6  ;;  %p2143_p13 = scmp.lt.s32.totalorder %s2141_s14, %s2135_s27 }
  0xcf   : > { %p2138_p3 = pneg %p2137_p7  ;;  %p2144_p2 = por %p2143_p13, %p2142_p12 }
  0xd1   : > { %p2145_p11 = pnand %p2144_p2, %p2138_p3 }
  0xd3   : > { %2148 = shalt.err (!%p2145_p11)
}
  0xd4   : > { %1875 = dma.hbm_to_vmem [thread:$0]  (%p3130_p6), %s2688_s20, 2048, %s2682_s13, %s2692_s26, %s2305_s23, %s2305_s23, %s2306_s0  }
  0xd5 PF: > { %p3132_p5 = scmp.ne.s32.totalorder %s3125_s25, 0 }
  0xd6   : > { %s3133_s10 = sld [smem:[#allocation24_spill]] (!%p3132_p5)  ;;  %s3135_s17 = sld [smem:[#allocation30_spill]] (!%p3132_p5) }
  0xd7   : > { %492 = sbr.rel (%p3132_p5) target bundleno = 838 (0x346), region = 82  ;;  %s3134_s15 = sld [smem:[#allocation23_spill]] (!%p3132_p5) }
  0xdc   : > { %s495_s6 = sand.u32 (!%p3132_p5), 1, %s3133_s10   ;;  %p3136_p9 = scmp.ne.s32.totalorder (!%p3132_p5), %s3135_s17, 0 }
  0xdd   : > { %s501_s21 = sand.u32 (!%p3132_p5), 1, %s3134_s15   ;;  %s1576_s11 = sshll.u32 (!%p3132_p5), %s495_s6, 7 }
  0xde   : > { %s1577_s7 = sshll.u32 %s501_s21, 7  ;;  %s2723_s27 = scalar_lea.vmem [#allocation6], %s1576_s11 }
  0xdf   : > { %s502_s9 = scalar_lea.sflag [#allocation8], %s501_s21  ;;  %s2725_s1 = scalar_lea.vmem [#allocation7], %s1577_s7 }
  0xe0   : > { %2232 = dma.done.wait (%p3136_p9), %s502_s9, 2048  }
  0xe1   : > { %2234 = vsyncadd (%p3136_p9), %s502_s9, 4294965248  ;;  %s510_s25 = sand.u32 1, %s2436_s30   ;;  %s512_s23 = sand.u32 1, %s2253_s18  }
  0xe2   : > { %s1578_s0 = sshll.u32 %s512_s23, 7  ;;  %s511_s13 = scalar_lea.sflag [#allocation11], %s510_s25 }
  0xe3   : > { %s2735_s20 = scalar_lea.vmem [#allocation10], %s1578_s0  ;;  %p3137_p6 = scmp.ne.s32.totalorder %s3116_s12, 0 }
  0xe5   : > { %2236 = dma.done.wait (%p3137_p6), %s511_s13, 4096  }
  0xe6   : > { %2238 = vsyncadd (%p3137_p6), %s511_s13, 4294963200  ;;  %s2741_s26 = scalar_lea.vmem [#allocation12], %s1578_s0  ;;  %p3138_p1 = scmp.eq.s32.totalorder %s2436_s30, 0 }
  0xe8   : > { %2240 = dma.done.wait (%p3138_p1), [#allocation14], 2048   ;;  %p3139_p0 = pmov %p3138_p1 }
  0xe9   : > { %s3140_s16 = sld [smem:[#allocation26_spill]]  ;;  %s3141_s6 = sld [smem:[#allocation41_spill]] }
  0xea   : > { %2242 = vsyncadd (%p3139_p0), [#allocation14], 4294965248  ;;  %s3142_s7 = sld [smem:[#allocation42_spill]]  ;;  %s2758_s25 = scalar_lea.vmem [#allocation15], %s1578_s0 }
  0xeb   : > { %s3143_s13 = sld [smem:[#allocation25_spill]] }
  0xef   : > { %s1582_s14 = sshll.u32 %s3140_s16, 4 }
  0xf0   : > { %p593_p4 = scmp.lt.s32.totalorder %s1582_s14, 31 }
  0xf1   : > { %p1586_p8 = scmp.ne.s32.totalorder %s3143_s13, 0 }
  0xf2   : > { %s3191_s14 = smov (!%p593_p4, %s1582_s14), 31  ;;  %v2309_v16 = vmov (!%p1586_p8), 0.0  }
  0xf3   : > { %s1583_s10 = sshll.u32 %s3191_s14, 3  ;;  %608 = sbr.rel (%p1586_p8) target bundleno = 251 (0xfb), region = 106  ;;  %609 = vst [vmem:[#allocation2] sm:$0xff] (!%p1586_p8), %v2309_v16  ;;  %610 = vst [vmem:[#allocation2 + $0x8] sm:$0xff] (!%p1586_p8), %v2309_v16 }
  0xf4   : > { %s2751_s21 = scalar_lea.vmem %s3141_s6, %s1583_s10  ;;  %s2756_s9 = scalar_lea.vmem %s3142_s7, %s1583_s10  ;;  %611 = vst [vmem:[#allocation2 + $0x10] sm:$0xff] (!%p1586_p8), %v2309_v16  ;;  %612 = vst [vmem:[#allocation2 + $0x18] sm:$0xff] (!%p1586_p8), %v2309_v16 }
  0xf5   : > { %613 = vst [vmem:[#allocation2 + $0x20] sm:$0xff] (!%p1586_p8), %v2309_v16  ;;  %614 = vst [vmem:[#allocation2 + $0x28] sm:$0xff] (!%p1586_p8), %v2309_v16 }
  0xf6   : > { %615 = vst [vmem:[#allocation2 + $0x30] sm:$0xff] (!%p1586_p8), %v2309_v16  ;;  %616 = vst [vmem:[#allocation2 + $0x38] sm:$0xff] (!%p1586_p8), %v2309_v16 }
  0xf7   : > { %617 = vst [vmem:[#allocation2 + $0x40] sm:$0xff] (!%p1586_p8), %v2309_v16  ;;  %618 = vst [vmem:[#allocation2 + $0x48] sm:$0xff] (!%p1586_p8), %v2309_v16 }
  0xf8   : > { %619 = vst [vmem:[#allocation2 + $0x50] sm:$0xff] (!%p1586_p8), %v2309_v16  ;;  %620 = vst [vmem:[#allocation2 + $0x58] sm:$0xff] (!%p1586_p8), %v2309_v16 }
  0xf9   : > { %621 = vst [vmem:[#allocation2 + $0x60] sm:$0xff] (!%p1586_p8), %v2309_v16  ;;  %622 = vst [vmem:[#allocation2 + $0x68] sm:$0xff] (!%p1586_p8), %v2309_v16 }
  0xfa   : > { %623 = vst [vmem:[#allocation2 + $0x70] sm:$0xff] %v2309_v16  ;;  %624 = vst [vmem:[#allocation2 + $0x78] sm:$0xff] %v2309_v16 }
  0xfb PF: > { %s3144_s30 = sld [smem:[#allocation26_spill]]  ;;  %s3145_s16 = sld [smem:[#allocation25_spill]] }
 0x101   : > { %s625_s0 = sld [smem:[#allocation5 + %s3144_s30]] }
 0x107   : > { %p1587_p10 = scmp.ge.s32.totalorder %s3145_s16, %s625_s0 }
 0x108   : > { %v662_v17 = vld [vmem:[%s2725_s1] sm:$0xff] (!%p1587_p10)  ;;  %v663_v18 = vld [vmem:[%s2725_s1 + $0x8] sm:$0xff] (!%p1587_p10)  ;;  %v664_v19 = vld [vmem:[%s2725_s1 + $0x10] sm:$0xff] (!%p1587_p10) }
 0x109   : > { %629 = sbr.rel (%p1587_p10) target bundleno = 527 (0x20f), region = 110  ;;  %v1775_v20 = vpack.c.bf16 (!%p1587_p10), %v663_v18, %v662_v17  ;;  %v665_v21 = vld [vmem:[%s2725_s1 + $0x18] sm:$0xff] (!%p1587_p10)  ;;  %v666_v23 = vld [vmem:[%s2725_s1 + $0x20] sm:$0xff] (!%p1587_p10)  ;;  %v667_v24 = vld [vmem:[%s2725_s1 + $0x28] sm:$0xff] (!%p1587_p10) }
 0x10a   : > { %v1779_v22 = vpack.c.bf16 (!%p1587_p10), %v665_v21, %v664_v19  ;;  %v1783_v25 = vpack.c.bf16 (!%p1587_p10), %v667_v24, %v666_v23  ;;  %v630_v26 = vld [vmem:[%s2723_s27] sm:$0xff] (!%p1587_p10)  ;;  %v668_v28 = vld [vmem:[%s2725_s1 + $0x30] sm:$0xff] (!%p1587_p10)  ;;  %v669_v29 = vld [vmem:[%s2725_s1 + $0x38] sm:$0xff] (!%p1587_p10) }
 0x10b   : > { %1776 = vmatprep.subr.bf16.mxu0 (!%p1587_p10), %v1775_v20  ;;  %1839 = vmatprep.subr.bf16.mxu1 (!%p1587_p10), %v1775_v20  ;;  %v638_v27 = vld [vmem:[%s2723_s27 + $0x40] sm:$0xff] (!%p1587_p10)  ;;  %v1787_v30 = vpack.c.bf16 (!%p1587_p10), %v669_v29, %v668_v28  ;;  %v671_v32 = vld [vmem:[%s2725_s1 + $0x48] sm:$0xff] (!%p1587_p10)  ;;  %v672_v34 = vld [vmem:[%s2725_s1 + $0x50] sm:$0xff] (!%p1587_p10) }
 0x10c   : > { %1778 = vmatpush3.bf16.msra.mxu0 (!%p1587_p10), %v1775_v20  ;;  %1847 = vmatpush3.bf16.msra.mxu1 (!%p1587_p10), %v1775_v20  ;;  %v670_v31 = vld [vmem:[%s2725_s1 + $0x40] sm:$0xff] (!%p1587_p10)  ;;  %v673_v35 = vld [vmem:[%s2725_s1 + $0x58] sm:$0xff] (!%p1587_p10)  ;;  %v675_v38 = vld [vmem:[%s2725_s1 + $0x68] sm:$0xff] (!%p1587_p10) }
 0x10d   : > { %1780 = vmatprep.subr.bf16.mxu0 (!%p1587_p10), %v1779_v22  ;;  %1840 = vmatprep.subr.bf16.mxu1 (!%p1587_p10), %v1779_v22  ;;  %v1791_v33 = vpack.c.bf16 (!%p1587_p10), %v671_v32, %v670_v31  ;;  %v1795_v36 = vpack.c.bf16 (!%p1587_p10), %v673_v35, %v672_v34  ;;  %v674_v37 = vld [vmem:[%s2725_s1 + $0x60] sm:$0xff] (!%p1587_p10)  ;;  %v676_v40 = vld [vmem:[%s2725_s1 + $0x70] sm:$0xff] (!%p1587_p10)  ;;  %v677_v41 = vld [vmem:[%s2725_s1 + $0x78] sm:$0xff] (!%p1587_p10) }
 0x10e   : > { %1695 = vmatprep.mubr.f32.mxu0 (!%p1587_p10), %v630_v26  ;;  %1707 = vmatprep.mubr.f32.mxu1 (!%p1587_p10), %v638_v27  ;;  %v1799_v39 = vpack.c.bf16 (!%p1587_p10), %v675_v38, %v674_v37  ;;  %v1803_v42 = vpack.c.bf16 (!%p1587_p10), %v677_v41, %v676_v40  ;;  %v631_v43 = vld [vmem:[%s2723_s27 + $0x8] sm:$0xff] (!%p1587_p10)  ;;  %v632_v45 = vld [vmem:[%s2723_s27 + $0x10] sm:$0xff] (!%p1587_p10)  ;;  %v633_v47 = vld [vmem:[%s2723_s27 + $0x18] sm:$0xff] (!%p1587_p10) }
 0x10f   : > { %v639_v44 = vld [vmem:[%s2723_s27 + $0x48] sm:$0xff] (!%p1587_p10)  ;;  %v640_v46 = vld [vmem:[%s2723_s27 + $0x50] sm:$0xff] (!%p1587_p10)  ;;  %v641_v48 = vld [vmem:[%s2723_s27 + $0x58] sm:$0xff] (!%p1587_p10) }
 0x110   : > { %1782 = vmatpush3.bf16.msra.mxu0 %v1779_v22  ;;  %1848 = vmatpush3.bf16.msra.mxu1 %v1779_v22  ;;  %v634_v49 = vld [vmem:[%s2723_s27 + $0x20] sm:$0xff]  ;;  %v635_v51 = vld [vmem:[%s2723_s27 + $0x28] sm:$0xff]  ;;  %v636_v53 = vld [vmem:[%s2723_s27 + $0x30] sm:$0xff] }
 0x111   : > { %1784 = vmatprep.subr.bf16.mxu0 %v1783_v25  ;;  %1841 = vmatprep.subr.bf16.mxu1 %v1783_v25  ;;  %v642_v50 = vld [vmem:[%s2723_s27 + $0x60] sm:$0xff]  ;;  %v643_v52 = vld [vmem:[%s2723_s27 + $0x68] sm:$0xff]  ;;  %v644_v54 = vld [vmem:[%s2723_s27 + $0x70] sm:$0xff] }
 0x112   : > { %v637_v55 = vld [vmem:[%s2723_s27 + $0x38] sm:$0xff]  ;;  %v647_v57 = vld [vmem:[#allocation2 + $0x8] sm:$0xff]  ;;  %v646_v59 = vld [vmem:[#allocation2] sm:$0xff] }
 0x113   : > { %v645_v56 = vld [vmem:[%s2723_s27 + $0x78] sm:$0xff]  ;;  %v655_v58 = vld [vmem:[#allocation2 + $0x48] sm:$0xff]  ;;  %v654_v60 = vld [vmem:[#allocation2 + $0x40] sm:$0xff] }
 0x114   : > { %1786 = vmatpush3.bf16.msra.mxu0 %v1783_v25  ;;  %1849 = vmatpush3.bf16.msra.mxu1 %v1783_v25  ;;  %v649_v5 = vld [vmem:[#allocation2 + $0x18] sm:$0xff]  ;;  %v648_v7 = vld [vmem:[#allocation2 + $0x10] sm:$0xff]  ;;  %v651_v17 = vld [vmem:[#allocation2 + $0x28] sm:$0xff] }
 0x115   : > { %1788 = vmatprep.subr.bf16.mxu0 %v1787_v30  ;;  %1842 = vmatprep.subr.bf16.mxu1 %v1787_v30  ;;  %v657_v6 = vld [vmem:[#allocation2 + $0x58] sm:$0xff]  ;;  %v656_v8 = vld [vmem:[#allocation2 + $0x50] sm:$0xff]  ;;  %v659_v18 = vld [vmem:[#allocation2 + $0x68] sm:$0xff] }
 0x116   : > { %v650_v19 = vld [vmem:[#allocation2 + $0x20] sm:$0xff]  ;;  %v653_v29 = vld [vmem:[#allocation2 + $0x38] sm:$0xff]  ;;  %v652_v31 = vld [vmem:[#allocation2 + $0x30] sm:$0xff] }
 0x117   : > { %v658_v20 = vld [vmem:[#allocation2 + $0x60] sm:$0xff]  ;;  %v660_v32 = vld [vmem:[#allocation2 + $0x70] sm:$0xff] }
 0x118   : > { %1790 = vmatpush3.bf16.msra.mxu0 %v1787_v30  ;;  %1850 = vmatpush3.bf16.msra.mxu1 %v1787_v30  ;;  %v661_v30 = vld [vmem:[#allocation2 + $0x78] sm:$0xff] }
 0x119   : > { %1792 = vmatprep.subr.bf16.mxu0 %v1791_v33  ;;  %1843 = vmatprep.subr.bf16.mxu1 %v1791_v33 }
 0x11c   : > { %1794 = vmatpush3.bf16.msra.mxu0 %v1791_v33  ;;  %1851 = vmatpush3.bf16.msra.mxu1 %v1791_v33 }
 0x11d   : > { %1796 = vmatprep.subr.bf16.mxu0 %v1795_v36  ;;  %1844 = vmatprep.subr.bf16.mxu1 %v1795_v36 }
 0x120   : > { %1798 = vmatpush3.bf16.msra.mxu0 %v1795_v36  ;;  %1852 = vmatpush3.bf16.msra.mxu1 %v1795_v36 }
 0x121   : > { %1800 = vmatprep.subr.bf16.mxu0 %v1799_v39  ;;  %1845 = vmatprep.subr.bf16.mxu1 %v1799_v39 }
 0x124   : > { %1802 = vmatpush3.bf16.msra.mxu0 %v1799_v39  ;;  %1853 = vmatpush3.bf16.msra.mxu1 %v1799_v39 }
 0x125   : > { %1804 = vmatprep.subr.bf16.mxu0 %v1803_v42  ;;  %1846 = vmatprep.subr.bf16.mxu1 %v1803_v42 }
 0x128   : > { %1806 = vmatpush3.bf16.msra.mxu0 %v1803_v42  ;;  %1854 = vmatpush3.bf16.msra.mxu1 %v1803_v42 }
 0x12b   : > { %1696 = vmatmul.mubr.f32.vlgmr.msra.gmra.mrb[0].mxu0 %v631_v43  ;;  %1708 = vmatmul.mubr.f32.vlgmr.msra.gmra.mrb[0].mxu1 %v639_v44 }
 0x12c   : > { %1698 = vmatprep.mubr.f32.mxu0 %v632_v45  ;;  %1710 = vmatprep.mubr.f32.mxu1 %v640_v46 }
 0x12f   : > { %1699 = vmatmul.mubr.f32.gmra.mrb[2].mxu0 %v633_v47  ;;  %1711 = vmatmul.mubr.f32.gmra.mrb[2].mxu1 %v641_v48 }
 0x130   : > { %1701 = vmatprep.mubr.f32.mxu0 %v634_v49  ;;  %1713 = vmatprep.mubr.f32.mxu1 %v642_v50 }
 0x133   : > { %1702 = vmatmul.mubr.f32.gmra.mrb[4].mxu0 %v635_v51  ;;  %1714 = vmatmul.mubr.f32.gmra.mrb[4].mxu1 %v643_v52 }
 0x134   : > { %1704 = vmatprep.mubr.f32.mxu0 %v636_v53  ;;  %1716 = vmatprep.mubr.f32.mxu1 %v644_v54 }
 0x137   : > { %1705 = vmatmul.mubr.f32.gmra.mrb[6].mxu0 %v637_v55  ;;  %1717 = vmatmul.mubr.f32.gmra.mrb[6].mxu1 %v645_v56 }
 0x1fe   : > { %v1697_v61 = vpop.f32.mrb[0].mxu0  ;;  %v1709_v62 = vpop.f32.mrb[0].mxu1 }
 0x1ff   : > { %v824_v63 = vadd.f32 %v1697_v61, %v647_v57  ;;  %v832_v0 = vadd.f32 %v1709_v62, %v655_v58  ;;  %v744_v1 = vpop.f32.mrb[1].mxu0  ;;  %v784_v2 = vpop.f32.mrb[1].mxu1 }
 0x200   : > { %v823_v3 = vadd.f32 %v744_v1, %v646_v59  ;;  %v831_v4 = vadd.f32 %v784_v2, %v654_v60 }
 0x201   : > { %840 = vst [vmem:[#allocation2 + $0x8] sm:$0xff] %v824_v63  ;;  %848 = vst [vmem:[#allocation2 + $0x48] sm:$0xff] %v832_v0 }
 0x202   : > { %839 = vst [vmem:[#allocation2] sm:$0xff] %v823_v3  ;;  %847 = vst [vmem:[#allocation2 + $0x40] sm:$0xff] %v831_v4  ;;  %v1700_v9 = vpop.f32.mrb[2].mxu0  ;;  %v1712_v10 = vpop.f32.mrb[2].mxu1 }
 0x203   : > { %v826_v11 = vadd.f32 %v1700_v9, %v649_v5  ;;  %v834_v12 = vadd.f32 %v1712_v10, %v657_v6  ;;  %v754_v13 = vpop.f32.mrb[3].mxu0  ;;  %v794_v14 = vpop.f32.mrb[3].mxu1 }
 0x204   : > { %v825_v15 = vadd.f32 %v754_v13, %v648_v7  ;;  %v833_v16 = vadd.f32 %v794_v14, %v656_v8 }
 0x205   : > { %842 = vst [vmem:[#allocation2 + $0x18] sm:$0xff] %v826_v11  ;;  %850 = vst [vmem:[#allocation2 + $0x58] sm:$0xff] %v834_v12 }
 0x206   : > { %841 = vst [vmem:[#allocation2 + $0x10] sm:$0xff] %v825_v15  ;;  %849 = vst [vmem:[#allocation2 + $0x50] sm:$0xff] %v833_v16  ;;  %v1703_v21 = vpop.f32.mrb[4].mxu0  ;;  %v1715_v22 = vpop.f32.mrb[4].mxu1 }
 0x207   : > { %v828_v23 = vadd.f32 %v1703_v21, %v651_v17  ;;  %v836_v24 = vadd.f32 %v1715_v22, %v659_v18  ;;  %v764_v25 = vpop.f32.mrb[5].mxu0  ;;  %v804_v26 = vpop.f32.mrb[5].mxu1 }
 0x208   : > { %v827_v27 = vadd.f32 %v764_v25, %v650_v19  ;;  %v835_v28 = vadd.f32 %v804_v26, %v658_v20 }
 0x209   : > { %844 = vst [vmem:[#allocation2 + $0x28] sm:$0xff] %v828_v23  ;;  %852 = vst [vmem:[#allocation2 + $0x68] sm:$0xff] %v836_v24 }
 0x20a   : > { %843 = vst [vmem:[#allocation2 + $0x20] sm:$0xff] %v827_v27  ;;  %851 = vst [vmem:[#allocation2 + $0x60] sm:$0xff] %v835_v28  ;;  %v1706_v33 = vpop.f32.mrb[6].mxu0  ;;  %v1718_v34 = vpop.f32.mrb[6].mxu1 }
 0x20b   : > { %v830_v35 = vadd.f32 %v1706_v33, %v653_v29  ;;  %v838_v36 = vadd.f32 %v1718_v34, %v661_v30  ;;  %v774_v37 = vpop.f32.mrb[7].mxu0  ;;  %v814_v38 = vpop.f32.mrb[7].mxu1 }
 0x20c   : > { %v829_v39 = vadd.f32 %v774_v37, %v652_v31  ;;  %v837_v40 = vadd.f32 %v814_v38, %v660_v32 }
 0x20d   : > { %846 = vst [vmem:[#allocation2 + $0x38] sm:$0xff] %v830_v35  ;;  %854 = vst [vmem:[#allocation2 + $0x78] sm:$0xff] %v838_v36 }
 0x20e   : > { %845 = vst [vmem:[#allocation2 + $0x30] sm:$0xff] %v829_v39  ;;  %853 = vst [vmem:[#allocation2 + $0x70] sm:$0xff] %v837_v40 }
 0x20f PF: > { %s3146_s27 = sld [smem:[#allocation25_spill]] }
 0x215   : > { %p1588_p7 = scmp.ne.s32.totalorder %s3146_s27, 1 }
 0x217   : > { %858 = sbr.rel (%p1588_p7) target bundleno = 810 (0x32a), region = 114 }
 0x21e   : > { %v875_v41 = vld [vmem:[#allocation13] sm:$0xff]  ;;  %v876_v42 = vld [vmem:[#allocation13 + $0x8] sm:$0xff]  ;;  %v877_v43 = vld [vmem:[#allocation13 + $0x10] sm:$0xff]  ;;  %v2310_v46 = vmov 0  }
 0x21f   : > { %v1807_v44 = vpack.c.bf16 %v876_v42, %v875_v41  ;;  %v878_v45 = vld [vmem:[#allocation13 + $0x18] sm:$0xff]  ;;  %2012 = vset.pattern.permute.xlu1 %v2310_v46  ;;  %2011 = vset.pattern.permute.xlu0 %v2310_v46  ;;  %v879_v48 = vld [vmem:[#allocation13 + $0x20] sm:$0xff]  ;;  %v880_v49 = vld [vmem:[#allocation13 + $0x28] sm:$0xff] }
 0x220   : > { %v1811_v47 = vpack.c.bf16 %v878_v45, %v877_v43  ;;  %v1038_v50 = vld [vmem:[%s2751_s21 + $0x10] sm:$0xff]  ;;  %v1036_v51 = vld [vmem:[%s2751_s21] sm:$0xff]  ;;  %v1815_v52 = vpack.c.bf16 %v880_v49, %v879_v48  ;;  %v882_v54 = vld [vmem:[#allocation13 + $0x38] sm:$0xff] }
 0x221   : > { %1808 = vmatprep.subr.bf16.mxu0 %v1807_v44  ;;  %1855 = vmatprep.subr.bf16.mxu1 %v1807_v44  ;;  %v881_v53 = vld [vmem:[#allocation13 + $0x30] sm:$0xff]  ;;  %v1039_v55 = vld [vmem:[%s2751_s21 + $0x18] sm:$0xff]  ;;  %v1037_v56 = vld [vmem:[%s2751_s21 + $0x8] sm:$0xff] }
 0x222   : > { %1810 = vmatpush3.bf16.msra.mxu0 %v1807_v44  ;;  %1863 = vmatpush3.bf16.msra.mxu1 %v1807_v44  ;;  %v1819_v57 = vpack.c.bf16 %v882_v54, %v881_v53  ;;  %v2801_v58 = vld [vmem:[%s2735_s20] sm:$0xff]  ;;  %v884_v61 = vld [vmem:[#allocation13 + $0x48] sm:$0xff]  ;;  %v885_v1 = vld [vmem:[#allocation13 + $0x50] sm:$0xff] }
 0x223   : > { %1812 = vmatprep.subr.bf16.mxu0 %v1811_v47  ;;  %1856 = vmatprep.subr.bf16.mxu1 %v1811_v47  ;;  %v2804_v59 = vld [vmem:[%s2735_s20 + $0x40] sm:$0xff]  ;;  %v1041_v62 = vld [vmem:[%s2751_s21 + $0x28] sm:$0xff]  ;;  %v886_v2 = vld [vmem:[#allocation13 + $0x58] sm:$0xff] }
 0x224   : > { %1080 = vperm.xlu1 %2012, %v1038_v50   ;;  %1070 = vperm.xlu0 %2011, %v1036_v51   ;;  %v883_v60 = vld [vmem:[#allocation13 + $0x40] sm:$0xff]  ;;  %v1043_v3 = vld [vmem:[%s2751_s21 + $0x38] sm:$0xff]  ;;  %v1042_v4 = vld [vmem:[%s2751_s21 + $0x30] sm:$0xff]  ;;  %v1827_v5 = vpack.c.bf16 %v886_v2, %v885_v1 }
 0x225   : > { %v1040_v63 = vld [vmem:[%s2751_s21 + $0x20] sm:$0xff]  ;;  %1751 = vmatprep.mubr.f32.mxu0 %v2801_v58  ;;  %1763 = vmatprep.mubr.f32.mxu1 %v2804_v59  ;;  %v1823_v0 = vpack.c.bf16 %v884_v61, %v883_v60  ;;  %v888_v7 = vld [vmem:[#allocation13 + $0x68] sm:$0xff]  ;;  %v889_v11 = vld [vmem:[#allocation13 + $0x70] sm:$0xff] }
 0x226   : > { %1814 = vmatpush3.bf16.msra.mxu0 %v1811_v47  ;;  %1864 = vmatpush3.bf16.msra.mxu1 %v1811_v47  ;;  %v887_v6 = vld [vmem:[#allocation13 + $0x60] sm:$0xff]  ;;  %v1045_v8 = vld [vmem:[%s2751_s21 + $0x48] sm:$0xff]  ;;  %v890_v12 = vld [vmem:[#allocation13 + $0x78] sm:$0xff] }
 0x227   : > { %1816 = vmatprep.subr.bf16.mxu0 %v1815_v52  ;;  %1857 = vmatprep.subr.bf16.mxu1 %v1815_v52  ;;  %v1044_v9 = vld [vmem:[%s2751_s21 + $0x40] sm:$0xff]  ;;  %v1831_v10 = vpack.c.bf16 %v888_v7, %v887_v6  ;;  %v1047_v13 = vld [vmem:[%s2751_s21 + $0x58] sm:$0xff]  ;;  %v1046_v14 = vld [vmem:[%s2751_s21 + $0x50] sm:$0xff]  ;;  %v1835_v15 = vpack.c.bf16 %v890_v12, %v889_v11 }
 0x228   : > { %1085 = vperm.xlu1 %2012, %v1039_v55   ;;  %1075 = vperm.xlu0 %2011, %v1037_v56   ;;  %v1049_v16 = vld [vmem:[%s2751_s21 + $0x68] sm:$0xff]  ;;  %v1048_v17 = vld [vmem:[%s2751_s21 + $0x60] sm:$0xff]  ;;  %v1051_v18 = vld [vmem:[%s2751_s21 + $0x78] sm:$0xff] }
 0x229   : > { %v1050_v19 = vld [vmem:[%s2751_s21 + $0x70] sm:$0xff]  ;;  %v2821_v20 = vld [vmem:[%s2735_s20 + $0x8] sm:$0xff]  ;;  %v1212_v25 = vld [vmem:[%s2756_s9] sm:$0xff] }
 0x22a   : > { %1818 = vmatpush3.bf16.msra.mxu0 %v1815_v52  ;;  %1865 = vmatpush3.bf16.msra.mxu1 %v1815_v52  ;;  %v2824_v21 = vld [vmem:[%s2735_s20 + $0x48] sm:$0xff]  ;;  %v2827_v22 = vld [vmem:[%s2735_s20 + $0x10] sm:$0xff]  ;;  %v2839_v26 = vld [vmem:[%s2735_s20 + $0x18] sm:$0xff] }
 0x22b   : > { %1820 = vmatprep.subr.bf16.mxu0 %v1819_v57  ;;  %1858 = vmatprep.subr.bf16.mxu1 %v1819_v57  ;;  %v2830_v23 = vld [vmem:[%s2735_s20 + $0x50] sm:$0xff]  ;;  %v1213_v24 = vld [vmem:[%s2756_s9 + $0x8] sm:$0xff]  ;;  %v2842_v27 = vld [vmem:[%s2735_s20 + $0x58] sm:$0xff] }
 0x22c   : > { %1095 = vperm.xlu1 %2012, %v1041_v62   ;;  %1090 = vperm.xlu0 %2011, %v1040_v63   ;;  %v2845_v28 = vld [vmem:[%s2735_s20 + $0x20] sm:$0xff]  ;;  %v1215_v30 = vld [vmem:[%s2756_s9 + $0x18] sm:$0xff]  ;;  %v1214_v31 = vld [vmem:[%s2756_s9 + $0x10] sm:$0xff] }
 0x22d   : > { %v2848_v29 = vld [vmem:[%s2735_s20 + $0x60] sm:$0xff]  ;;  %v2857_v32 = vld [vmem:[%s2735_s20 + $0x28] sm:$0xff]  ;;  %v2863_v34 = vld [vmem:[%s2735_s20 + $0x30] sm:$0xff] }
 0x22e   : > { %1822 = vmatpush3.bf16.msra.mxu0 %v1819_v57  ;;  %1866 = vmatpush3.bf16.msra.mxu1 %v1819_v57  ;;  %v2860_v33 = vld [vmem:[%s2735_s20 + $0x68] sm:$0xff]  ;;  %3147 = vst [vmem:[#allocation36_spill] sm:$0xff] %v2863_v34  ;;  %v2866_v35 = vld [vmem:[%s2735_s20 + $0x70] sm:$0xff]  ;;  %v1216_v37 = vld [vmem:[%s2756_s9 + $0x20] sm:$0xff] }
 0x22f   : > { %1824 = vmatprep.subr.bf16.mxu0 %v1823_v0  ;;  %1859 = vmatprep.subr.bf16.mxu1 %v1823_v0  ;;  %3148 = vst [vmem:[#allocation37_spill] sm:$0xff] %v2866_v35  ;;  %v1217_v36 = vld [vmem:[%s2756_s9 + $0x28] sm:$0xff]  ;;  %v2875_v38 = vld [vmem:[%s2735_s20 + $0x38] sm:$0xff]  ;;  %v1218_v41 = vld [vmem:[%s2756_s9 + $0x30] sm:$0xff] }
 0x230   : > { %1105 = vperm.xlu1 %2012, %v1043_v3   ;;  %1100 = vperm.xlu0 %2011, %v1042_v4   ;;  %v2878_v39 = vld [vmem:[%s2735_s20 + $0x78] sm:$0xff]  ;;  %v1221_v42 = vld [vmem:[%s2756_s9 + $0x48] sm:$0xff]  ;;  %v1220_v43 = vld [vmem:[%s2756_s9 + $0x40] sm:$0xff] }
 0x231   : > { %3149 = vst [vmem:[#allocation38_spill] sm:$0xff] %v2878_v39  ;;  %v1219_v40 = vld [vmem:[%s2756_s9 + $0x38] sm:$0xff]  ;;  %v1222_v45 = vld [vmem:[%s2756_s9 + $0x50] sm:$0xff]  ;;  %v1225_v46 = vld [vmem:[%s2756_s9 + $0x68] sm:$0xff] }
 0x232   : > { %1826 = vmatpush3.bf16.msra.mxu0 %v1823_v0  ;;  %1867 = vmatpush3.bf16.msra.mxu1 %v1823_v0  ;;  %v1223_v44 = vld [vmem:[%s2756_s9 + $0x58] sm:$0xff]  ;;  %v1224_v47 = vld [vmem:[%s2756_s9 + $0x60] sm:$0xff]  ;;  %v1226_v49 = vld [vmem:[%s2756_s9 + $0x70] sm:$0xff] }
 0x233   : > { %1828 = vmatprep.subr.bf16.mxu0 %v1827_v5  ;;  %1860 = vmatprep.subr.bf16.mxu1 %v1827_v5  ;;  %v1227_v48 = vld [vmem:[%s2756_s9 + $0x78] sm:$0xff] }
 0x234   : > { %1115 = vperm.xlu1 %2012, %v1045_v8   ;;  %1110 = vperm.xlu0 %2011, %v1044_v9  }
 0x236   : > { %1830 = vmatpush3.bf16.msra.mxu0 %v1827_v5  ;;  %1868 = vmatpush3.bf16.msra.mxu1 %v1827_v5 }
 0x237   : > { %1832 = vmatprep.subr.bf16.mxu0 %v1831_v10  ;;  %1861 = vmatprep.subr.bf16.mxu1 %v1831_v10 }
 0x238   : > { %1125 = vperm.xlu1 %2012, %v1047_v13   ;;  %1120 = vperm.xlu0 %2011, %v1046_v14   ;;  %v1054_v14 = vld [vmem:[#allocation2 + $0x10] sm:$0xff] }
 0x23a   : > { %1834 = vmatpush3.bf16.msra.mxu0 %v1831_v10  ;;  %1869 = vmatpush3.bf16.msra.mxu1 %v1831_v10 }
 0x23b   : > { %1836 = vmatprep.subr.bf16.mxu0 %v1835_v15  ;;  %1862 = vmatprep.subr.bf16.mxu1 %v1835_v15 }
 0x23c   : > { %1135 = vperm.xlu1 %2012, %v1049_v16   ;;  %1130 = vperm.xlu0 %2011, %v1048_v17   ;;  %v1055_v16 = vld [vmem:[#allocation2 + $0x18] sm:$0xff]  ;;  %v1053_v17 = vld [vmem:[#allocation2 + $0x8] sm:$0xff] }
 0x23e   : > { %1838 = vmatpush3.bf16.msra.mxu0 %v1835_v15  ;;  %1870 = vmatpush3.bf16.msra.mxu1 %v1835_v15  ;;  %v1052_v15 = vld [vmem:[#allocation2] sm:$0xff] }
 0x240   : > { %1145 = vperm.xlu1 %2012, %v1051_v18   ;;  %1140 = vperm.xlu0 %2011, %v1050_v19   ;;  %v1057_v18 = vld [vmem:[#allocation2 + $0x28] sm:$0xff]  ;;  %v1056_v19 = vld [vmem:[#allocation2 + $0x20] sm:$0xff] }
 0x241   : > { %1752 = vmatmul.mubr.f32.vlgmr.msra.gmra.mrb[0].mxu0 %v2821_v20  ;;  %1764 = vmatmul.mubr.f32.vlgmr.msra.gmra.mrb[0].mxu1 %v2824_v21 }
 0x242   : > { %1754 = vmatprep.mubr.f32.mxu0 %v2827_v22  ;;  %1766 = vmatprep.mubr.f32.mxu1 %v2830_v23 }
 0x244   : > { %1235 = vperm.xlu1 %2012, %v1213_v24   ;;  %1230 = vperm.xlu0 %2011, %v1212_v25   ;;  %v1059_v24 = vld [vmem:[#allocation2 + $0x38] sm:$0xff]  ;;  %v1058_v25 = vld [vmem:[#allocation2 + $0x30] sm:$0xff] }
 0x245   : > { %1755 = vmatmul.mubr.f32.gmra.mrb[2].mxu0 %v2839_v26  ;;  %1767 = vmatmul.mubr.f32.gmra.mrb[2].mxu1 %v2842_v27 }
 0x246   : > { %1757 = vmatprep.mubr.f32.mxu0 %v2845_v28  ;;  %1769 = vmatprep.mubr.f32.mxu1 %v2848_v29 }
 0x248   : > { %1245 = vperm.xlu1 %2012, %v1215_v30   ;;  %1240 = vperm.xlu0 %2011, %v1214_v31   ;;  %v1061_v30 = vld [vmem:[#allocation2 + $0x48] sm:$0xff]  ;;  %v1060_v31 = vld [vmem:[#allocation2 + $0x40] sm:$0xff] }
 0x249   : > { %1758 = vmatmul.mubr.f32.gmra.mrb[4].mxu0 %v2857_v32  ;;  %1770 = vmatmul.mubr.f32.gmra.mrb[4].mxu1 %v2860_v33 }
 0x24a   : > { %1760 = vmatprep.mubr.f32.mxu0 %v2863_v34  ;;  %1772 = vmatprep.mubr.f32.mxu1 %v2866_v35  ;;  %v1067_v34 = vld [vmem:[#allocation2 + $0x78] sm:$0xff] }
 0x24c   : > { %1255 = vperm.xlu1 %2012, %v1217_v36   ;;  %1250 = vperm.xlu0 %2011, %v1216_v37   ;;  %v1063_v36 = vld [vmem:[#allocation2 + $0x58] sm:$0xff]  ;;  %v1062_v37 = vld [vmem:[#allocation2 + $0x50] sm:$0xff] }
 0x24d   : > { %1761 = vmatmul.mubr.f32.gmra.mrb[6].mxu0 %v2875_v38  ;;  %1773 = vmatmul.mubr.f32.gmra.mrb[6].mxu1 %v2878_v39  ;;  %v1066_v39 = vld [vmem:[#allocation2 + $0x70] sm:$0xff] }
 0x250   : > { %1265 = vperm.xlu1 %2012, %v1219_v40   ;;  %1260 = vperm.xlu0 %2011, %v1218_v41  }
 0x254   : > { %1275 = vperm.xlu1 %2012, %v1221_v42   ;;  %1270 = vperm.xlu0 %2011, %v1220_v43  }
 0x258   : > { %1285 = vperm.xlu1 %2012, %v1223_v44   ;;  %1280 = vperm.xlu0 %2011, %v1222_v45  }
 0x25c   : > { %1295 = vperm.xlu1 %2012, %v1225_v46   ;;  %1290 = vperm.xlu0 %2011, %v1224_v47   ;;  %v1065_v46 = vld [vmem:[#allocation2 + $0x68] sm:$0xff]  ;;  %v1064_v47 = vld [vmem:[#allocation2 + $0x60] sm:$0xff] }
 0x260   : > { %1305 = vperm.xlu1 %2012, %v1227_v48   ;;  %1300 = vperm.xlu0 %2011, %v1226_v49  }
 0x2a3   : > { %v1081_v50 = vpop.permute.xlu1 %1080  ;;  %v1071_v51 = vpop.permute.xlu0 %1070 }
 0x2a4   : > { %v1150_v42 = vmul.f32 %v1081_v50, %v1054_v14  ;;  %v1148_v43 = vmul.f32 %v1071_v51, %v1052_v15  ;;  %v1181_v14 = vld [vmem:[%s2741_s26 + $0x8] sm:$0xff] }
 0x2a7   : > { %v1086_v52 = vpop.permute.xlu1 %1085  ;;  %v1076_v53 = vpop.permute.xlu0 %1075 }
 0x2a8   : > { %v1151_v44 = vmul.f32 %v1086_v52, %v1055_v16  ;;  %v1149_v45 = vmul.f32 %v1076_v53, %v1053_v17  ;;  %v1189_v16 = vld [vmem:[%s2741_s26 + $0x48] sm:$0xff] }
 0x2ab   : > { %v1096_v54 = vpop.permute.xlu1 %1095  ;;  %v1091_v55 = vpop.permute.xlu0 %1090 }
 0x2ac   : > { %v2906_v48 = vmul.f32 %v1096_v54, %v1057_v18  ;;  %v2908_v49 = vmul.f32 %v1091_v55, %v1056_v19 }
 0x2af   : > { %v1106_v56 = vpop.permute.xlu1 %1105  ;;  %v1101_v57 = vpop.permute.xlu0 %1100 }
 0x2b0   : > { %v2910_v35 = vmul.f32 %v1106_v56, %v1059_v24  ;;  %v1188_v24 = vld [vmem:[%s2741_s26 + $0x40] sm:$0xff] }
 0x2b3   : > { %v1116_v60 = vpop.permute.xlu1 %1115  ;;  %v1111_v61 = vpop.permute.xlu0 %1110 }
 0x2b4   : > { %v1156_v50 = vmul.f32 %v1111_v61, %v1060_v31 }
 0x2b7   : > { %v1126_v62 = vpop.permute.xlu1 %1125  ;;  %v1121_v63 = vpop.permute.xlu0 %1120 }
 0x2b8   : > { %v1159_v51 = vmul.f32 %v1126_v62, %v1063_v36  ;;  %v1158_v52 = vmul.f32 %v1121_v63, %v1062_v37  ;;  %v1183_v37 = vld [vmem:[%s2741_s26 + $0x18] sm:$0xff] }
 0x2bb   : > { %v1136_v0 = vpop.permute.xlu1 %1135  ;;  %v1131_v1 = vpop.permute.xlu0 %1130 }
 0x2bc   : > { %v1161_v54 = vmul.f32 %v1136_v0, %v1065_v46  ;;  %v2916_v17 = vmul.f32 %v1131_v1, %v1064_v47  ;;  %v1182_v47 = vld [vmem:[%s2741_s26 + $0x10] sm:$0xff] }
 0x2bf   : > { %v1146_v2 = vpop.permute.xlu1 %1145  ;;  %v1141_v3 = vpop.permute.xlu0 %1140 }
 0x2c3   : > { %v1236_v4 = vpop.permute.xlu1 %1235  ;;  %v1231_v5 = vpop.permute.xlu0 %1230 }
 0x2c4   : > { %v1309_v63 = vmul.f32 %v1236_v4, %v2821_v20  ;;  %v1308_v36 = vmul.f32 %v1231_v5, %v2801_v58  ;;  %v1190_v58 = vld [vmem:[%s2741_s26 + $0x50] sm:$0xff] }
 0x2c7   : > { %v2892_v6 = vpop.permute.xlu1 %1245  ;;  %v2894_v7 = vpop.permute.xlu0 %1240 }
 0x2cb   : > { %v2896_v8 = vpop.permute.xlu1 %1255  ;;  %v2898_v9 = vpop.permute.xlu0 %1250 }
 0x2cf   : > { %v2900_v10 = vpop.permute.xlu1 %1265  ;;  %v2902_v11 = vpop.permute.xlu0 %1260 }
 0x2d0   : > { %3150 = vst [vmem:[#allocation39_spill] sm:$0xff] %v2900_v10  ;;  %3151 = vst [vmem:[#allocation40_spill] sm:$0xff] %v2902_v11  ;;  %v1157_v11 = vmul.f32 %v1116_v60, %v1061_v30  ;;  %v2912_v10 = vmul.f32 %v1101_v57, %v1058_v25  ;;  %v1180_v60 = vld [vmem:[%s2741_s26] sm:$0xff]  ;;  %v2920_v30 = vmul.f32 %v1146_v2, %v1067_v34 }
 0x2d1   : > { %v2922_v57 = vmul.f32 %v1141_v3, %v1066_v39 }
 0x2d3   : > { %v1276_v12 = vpop.permute.xlu1 %1275  ;;  %v1271_v13 = vpop.permute.xlu0 %1270 }
 0x2d4   : > { %v1317_v0 = vmul.f32 %v1276_v12, %v2824_v21  ;;  %v1316_v34 = vmul.f32 %v1271_v13, %v2804_v59 }
 0x2d7   : > { %v1286_v40 = vpop.permute.xlu1 %1285  ;;  %v2904_v41 = vpop.permute.xlu0 %1280 }
 0x2db   : > { %v1296_v1 = vpop.permute.xlu1 %1295  ;;  %v1291_v25 = vpop.permute.xlu0 %1290 }
 0x314   : > { %v1753_v53 = vpop.f32.mrb[0].mxu0  ;;  %v1765_v15 = vpop.f32.mrb[0].mxu1 }
 0x315   : > { %v1165_v55 = vadd.f32 %v1753_v53, %v1149_v45  ;;  %v1173_v56 = vadd.f32 %v1765_v15, %v1157_v11  ;;  %v957_v18 = vpop.f32.mrb[1].mxu0  ;;  %v997_v19 = vpop.f32.mrb[1].mxu1  ;;  %v1191_v45 = vld [vmem:[%s2741_s26 + $0x58] sm:$0xff]  ;;  %v1319_v15 = vmul.f32 %v1286_v40, %v2842_v27  ;;  %v1193_v27 = vld [vmem:[%s2741_s26 + $0x68] sm:$0xff] }
 0x316   : > { %v1164_v61 = vadd.f32 %v1148_v43, %v957_v18  ;;  %v1172_v62 = vadd.f32 %v1156_v50, %v997_v19 }
 0x317   : > { %v1197_v11 = vadd.f32 %v1181_v14, %v1165_v55  ;;  %v1205_v31 = vadd.f32 %v1189_v16, %v1173_v56  ;;  %v1311_v14 = vmul.f32 %v2892_v6, %v2839_v26  ;;  %v1310_v16 = vmul.f32 %v2894_v7, %v2827_v22  ;;  %v1185_v26 = vld [vmem:[%s2741_s26 + $0x28] sm:$0xff]  ;;  %v1184_v7 = vld [vmem:[%s2741_s26 + $0x20] sm:$0xff] }
 0x318   : > { %v1196_v2 = vadd.f32 %v1180_v60, %v1164_v61  ;;  %v1204_v39 = vadd.f32 %v1188_v24, %v1172_v62  ;;  %v1756_v3 = vpop.f32.mrb[2].mxu0  ;;  %v1768_v43 = vpop.f32.mrb[2].mxu1  ;;  %v1318_v55 = vmul.f32 %v2904_v41, %v2830_v23  ;;  %v1192_v23 = vld [vmem:[%s2741_s26 + $0x60] sm:$0xff] }
 0x319   : > { %v1325_v20 = vsub.f32 %v1197_v11, %v1309_v63  ;;  %v1333_v21 = vsub.f32 %v1205_v31, %v1317_v0  ;;  %v1167_v4 = vadd.f32 %v1756_v3, %v1151_v44  ;;  %v1175_v12 = vadd.f32 %v1768_v43, %v1159_v51  ;;  %v967_v46 = vpop.f32.mrb[3].mxu0  ;;  %v1007_v50 = vpop.f32.mrb[3].mxu1 }
 0x31a   : > { %v1324_v5 = vsub.f32 %v1196_v2, %v1308_v36  ;;  %v1332_v59 = vsub.f32 %v1204_v39, %v1316_v34  ;;  %v1166_v13 = vadd.f32 %v1150_v42, %v967_v46  ;;  %v1174_v53 = vadd.f32 %v1158_v52, %v1007_v50  ;;  %v1195_v2 = vld [vmem:[%s2741_s26 + $0x78] sm:$0xff] }
 0x31b   : > { %1341 = vst [vmem:[%s2758_s25 + $0x8] sm:$0xff] %v1325_v20  ;;  %1349 = vst [vmem:[%s2758_s25 + $0x48] sm:$0xff] %v1333_v21  ;;  %v1199_v44 = vadd.f32 %v1183_v37, %v1167_v4  ;;  %v1207_v51 = vadd.f32 %v1191_v45, %v1175_v12  ;;  %v1313_v0 = vmul.f32 %v2896_v8, %v2857_v32  ;;  %v3152_v12 = vld [vmem:[#allocation39_spill] sm:$0xff] }
 0x31c   : > { %1340 = vst [vmem:[%s2758_s25] sm:$0xff] %v1324_v5  ;;  %1348 = vst [vmem:[%s2758_s25 + $0x40] sm:$0xff] %v1332_v59  ;;  %v1198_v42 = vadd.f32 %v1182_v47, %v1166_v13  ;;  %v1206_v52 = vadd.f32 %v1190_v58, %v1174_v53  ;;  %v1759_v56 = vpop.f32.mrb[4].mxu0  ;;  %v1771_v6 = vpop.f32.mrb[4].mxu1  ;;  %v1321_v11 = vmul.f32 %v1296_v1, %v2860_v33  ;;  %v1187_v33 = vld [vmem:[%s2741_s26 + $0x38] sm:$0xff]  ;;  %v3153_v47 = vld [vmem:[#allocation38_spill] sm:$0xff] }
 0x31d   : > { %v1327_v40 = vsub.f32 %v1199_v44, %v1311_v14  ;;  %v1335_v18 = vsub.f32 %v1207_v51, %v1319_v15  ;;  %v1169_v60 = vadd.f32 %v1759_v56, %v2906_v48  ;;  %v1177_v19 = vadd.f32 %v1771_v6, %v1161_v54  ;;  %v977_v22 = vpop.f32.mrb[5].mxu0  ;;  %v1017_v24 = vpop.f32.mrb[5].mxu1  ;;  %v3154_v58 = vld [vmem:[#allocation36_spill] sm:$0xff]  ;;  %v3156_v13 = vld [vmem:[#allocation37_spill] sm:$0xff] }
 0x31e   : > { %v1326_v41 = vsub.f32 %v1198_v42, %v1310_v16  ;;  %v1334_v61 = vsub.f32 %v1206_v52, %v1318_v55  ;;  %v1168_v62 = vadd.f32 %v2908_v49, %v977_v22  ;;  %v1176_v63 = vadd.f32 %v2916_v17, %v1017_v24  ;;  %v1306_v48 = vpop.permute.xlu1 %1305  ;;  %v1301_v54 = vpop.permute.xlu0 %1300  ;;  %v3155_v5 = vld [vmem:[#allocation40_spill] sm:$0xff] }
 0x31f   : > { %1343 = vst [vmem:[%s2758_s25 + $0x18] sm:$0xff] %v1327_v40  ;;  %1351 = vst [vmem:[%s2758_s25 + $0x58] sm:$0xff] %v1335_v18  ;;  %v1201_v31 = vadd.f32 %v1185_v26, %v1169_v60  ;;  %v1209_v36 = vadd.f32 %v1193_v27, %v1177_v19  ;;  %v1312_v34 = vmul.f32 %v2898_v9, %v2845_v28 }
 0x320   : > { %v1320_v49 = vmul.f32 %v1291_v25, %v2848_v29  ;;  %1342 = vst [vmem:[%s2758_s25 + $0x10] sm:$0xff] %v1326_v41  ;;  %1350 = vst [vmem:[%s2758_s25 + $0x50] sm:$0xff] %v1334_v61  ;;  %v1200_v17 = vadd.f32 %v1184_v7, %v1168_v62  ;;  %v1208_v32 = vadd.f32 %v1192_v23, %v1176_v63  ;;  %v1762_v8 = vpop.f32.mrb[6].mxu0  ;;  %v1774_v1 = vpop.f32.mrb[6].mxu1  ;;  %v1186_v29 = vld [vmem:[%s2741_s26 + $0x30] sm:$0xff] }
 0x321   : > { %v1329_v39 = vsub.f32 %v1201_v31, %v1313_v0  ;;  %v1337_v3 = vsub.f32 %v1209_v36, %v1321_v11  ;;  %v1171_v37 = vadd.f32 %v1762_v8, %v2910_v35  ;;  %v1179_v43 = vadd.f32 %v1774_v1, %v2920_v30  ;;  %v987_v28 = vpop.f32.mrb[7].mxu0  ;;  %v1027_v9 = vpop.f32.mrb[7].mxu1  ;;  %v1194_v25 = vld [vmem:[%s2741_s26 + $0x70] sm:$0xff] }
 0x322   : > { %v1328_v45 = vsub.f32 %v1200_v17, %v1312_v34  ;;  %v1336_v20 = vsub.f32 %v1208_v32, %v1320_v49  ;;  %v1170_v21 = vadd.f32 %v2912_v10, %v987_v28  ;;  %v1178_v4 = vadd.f32 %v2922_v57, %v1027_v9 }
 0x323   : > { %v1315_v46 = vmul.f32 %v3152_v12, %v2875_v38  ;;  %v1323_v35 = vmul.f32 %v1306_v48, %v3153_v47  ;;  %1345 = vst [vmem:[%s2758_s25 + $0x28] sm:$0xff] %v1329_v39  ;;  %1353 = vst [vmem:[%s2758_s25 + $0x68] sm:$0xff] %v1337_v3  ;;  %v1203_v30 = vadd.f32 %v1187_v33, %v1171_v37 }
 0x324   : > { %v1211_v50 = vadd.f32 %v1195_v2, %v1179_v43  ;;  %v1314_v59 = vmul.f32 %v3155_v5, %v3154_v58  ;;  %v1322_v10 = vmul.f32 %v1301_v54, %v3156_v13  ;;  %1344 = vst [vmem:[%s2758_s25 + $0x20] sm:$0xff] %v1328_v45  ;;  %1352 = vst [vmem:[%s2758_s25 + $0x60] sm:$0xff] %v1336_v20 }
 0x325   : > { %v1202_v57 = vadd.f32 %v1186_v29, %v1170_v21  ;;  %v1210_v53 = vadd.f32 %v1194_v25, %v1178_v4  ;;  %v1331_v38 = vsub.f32 %v1203_v30, %v1315_v46 }
 0x326   : > { %v1339_v14 = vsub.f32 %v1211_v50, %v1323_v35 }
 0x327   : > { %v1330_v15 = vsub.f32 %v1202_v57, %v1314_v59  ;;  %v1338_v44 = vsub.f32 %v1210_v53, %v1322_v10  ;;  %1347 = vst [vmem:[%s2758_s25 + $0x38] sm:$0xff] %v1331_v38 }
 0x328   : > { %1355 = vst [vmem:[%s2758_s25 + $0x78] sm:$0xff] %v1339_v14 }
 0x329   : > { %1346 = vst [vmem:[%s2758_s25 + $0x30] sm:$0xff] %v1330_v15  ;;  %1354 = vst [vmem:[%s2758_s25 + $0x70] sm:$0xff] %v1338_v44 }
 0x32a PF: > { %s3157_s1 = sld [smem:[#allocation26_spill]]  ;;  %s3158_s20 = sld [smem:[#allocation34_spill]] }
 0x32b   : > { %s3159_s15 = sld [smem:[#allocation43_spill]]  ;;  %s1370_s6 = sshll.u32 %s2758_s25, 4  ;;  %s2989_s6 = int_to_ptr.vmem [resolvable:$true] %s1370_s6 }
 0x32c   : > { %s2993_s21 = scalar_lea.sflag [#allocation9], %s512_s23  ;;  %s2149_s12 = scalar_lea.vmem %s2989_s6, 2048 }
 0x32d   : > { %p2150_p3 = scmp.ne.s32.totalorder %s2989_s6, %s2149_s12  ;;  %s2311_s11 = smov [#allocation15]  }
 0x32e   : > { %s2153_s7 = sshll.u32 %s2311_s11, 4  ;;  %s2154_s7 = int_to_ptr.vmem [resolvable:$false] %s2153_s7 }
 0x32f   : > { %s2155_s9 = scalar_lea.vmem %s2154_s7, 4096  ;;  %p2156_p11 = scmp.lt.s32.totalorder %s2989_s6, %s2154_s7 }
 0x330   : > { %s1598_s26 = sshll.u32 %s3157_s1, 11  ;;  %p3160_p12 = scmp.ne.s32.totalorder %s3158_s20, 0 }
 0x331   : > { %s2986_s17 = scalar_lea.hbm %s3159_s15, %s1598_s26  ;;  %p2157_p5 = scmp.lt.s32.totalorder %s2155_s9, %s2149_s12 }
 0x332   : > { %p2151_p13 = pnand %p2150_p3, %p3160_p12 }
 0x333   : > { %p2158_p9 = por %p2157_p5, %p2156_p11 }
 0x334   : > { %p2152_p2 = pneg %p2151_p13 }
 0x336   : > { %p2159_p6 = pnand %p2158_p9, %p2152_p2 }
 0x338   : > { %2162 = shalt.err (!%p2159_p6)
}
 0x339   : > { %s2163_s23 = scalar_lea.hbm %s2986_s17, 2048  ;;  %s2167_s30 = scalar_lea.hbm %s3159_s15, 4096 }
 0x33a   : > { %p2164_p1 = scmp.ne.s32.totalorder %s2986_s17, %s2163_s23  ;;  %p2168_p8 = scmp.lt.u32.totalorder %s2986_s17, %s3159_s15 }
 0x33b   : > { %p2169_p10 = scmp.lt.u32.totalorder %s2167_s30, %s2163_s23  ;;  %p2171_p3 = scmp.lt.u32.totalorder %s2163_s23, %s2986_s17 }
 0x33c   : > { %p2165_p0 = pnand %p2164_p1, %p3160_p12 }
 0x33d   : > { %p2170_p7 = por %p2169_p10, %p2168_p8 }
 0x33e   : > { %p2166_p4 = pneg %p2165_p0 }
 0x33f   : > { %p2172_p13 = por %p2171_p3, %p2170_p7 }
 0x341   : > { %p2173_p2 = pnand %p2172_p13, %p2166_p4 }
 0x343   : > { %2176 = shalt.err (!%p2173_p2)
}
 0x344   : > { %s2312_s27 = smov 128   ;;  %s2313_s1 = smov 8  }
 0x345   : > { %1883 = dma.vmem_to_hbm [thread:$0]  (%p3160_p12), %s2989_s6, 2048, %s2986_s17, %s2993_s21, %s2312_s27, %s2312_s27, %s2313_s1  }
 0x346 PF: > { %s3161_s26 = sld [smem:[#allocation22_spill]]  ;;  %s3162_s14 = sld [smem:[#allocation35_spill]] }
 0x347   : > { %p1895_p11 = scmp.ge.s32.totalorder %s2297_s29, 2 }
 0x34c   : > { %s1385_s10 = sand.u32 1, %s3161_s26   ;;  %p3163_p5 = scmp.ne.s32.totalorder %s3162_s14, 0 }
 0x34d   : > { %s1386_s12 = scalar_lea.sflag [#allocation9], %s1385_s10 }
 0x34e   : > { %p1890_p9 = pnand %p1895_p11, %p3163_p5 }
 0x350   : > { %2244 = dma.done.wait (!%p1890_p9), %s1386_s12, 2048  }
 0x351   : > { %2246 = vsyncadd (!%p1890_p9), %s1386_s12, 4294965248  ;;  %s39_s29 = sadd.s32 1, %s2297_s29   ;;  %s3165_s20 = sld [smem:[#allocation31_spill]] }
 0x352   : > { %p3022_p6 = scmp.ge.s32.totalorder %s39_s29, 6   ;;  %s3166_s17 = sld [smem:[#allocation23_spill]] }
 0x353   : > { %s3167_s6 = sld [smem:[#allocation32_spill]]  ;;  %s3168_s7 = sld [smem:[#allocation33_spill]] }
 0x354   : > { %s3169_s25 = sld [smem:[#allocation27_spill]]  ;;  %s3170_s27 = sld [smem:[#allocation28_spill]] }
 0x355   : > { %s3171_s9 = sld [smem:[#allocation29_spill]]  ;;  %s3172_s1 = smov %s2253_s18 }
 0x356   : > { %s3173_s18 = smov %s2257_s19  ;;  %s3176_s21 = smov %s2269_s22 }
 0x357   : > { %s3174_s19 = smov %s3165_s20  ;;  %s3178_s23 = smov %s2277_s24 }
 0x358   : > { %s3175_s20 = smov %s3166_s17  ;;  %s3180_s26 = smov %s2293_s28 }
 0x359   : > { %s3177_s22 = smov %s3167_s6  ;;  %s3179_s24 = smov %s3168_s7 }
 0x35a   :  { %38 = sbr.rel (!%p3022_p6) target bundleno = 40 (0x28), region = 185 }
 0x35b   : > { %s3181_s28 = smov %s3171_s9 }
 0x361   :  { %1391 = vsyncpa [#allocation8], 1 }
 0x362   :  { %1393 = vsyncpa [#allocation8 + $0x1], 1 }
 0x363   :  { %1394 = vsyncpa [#allocation11], 1 }
 0x364   :  { %1396 = vsyncpa [#allocation11 + $0x1], 1 }
 0x365   :  { %1397 = vsyncpa [#allocation14], 1 }
 0x366   :  { %1398 = vsyncpa [#allocation9], 1 }
 0x367   :  { %1400 = vsyncpa [#allocation9 + $0x1], 1 }

</bundles_post_ra>
